<compile_context>
chip_gen: v7x
topology: tpu7x:2x2x1
jax: 0.10.0
libtpu: 0.0.40
codegen_flags: <defaults>
</compile_context>

<pallas_src>
import math

import jax
import jax.numpy as jnp
import numpy as np
from jax.experimental import pallas as pl
from jax.experimental.pallas import tpu as pltpu

IN_DIM = 128                 # in_dim
MEM_DIM = 128                # mem_dim
MAX_CHILDREN = 8             # padded child arity (sublane multiple)
K_TOT = IN_DIM + MEM_DIM     # fused LHS width: [x | child_h_sum]
N_OUT = 8 * MEM_DIM + 128    # [iou_vis(384)|iou_lang(384)|fx_vis|fx_lang|tq(+pad)]


# --------------------------------------------------------------------------
# Pallas kernel: whole UpTreeLSTM tree, one node per grid step
# --------------------------------------------------------------------------
def _uptree_kernel(cidx_ref,                       # SMEM: child-index table
                   x_ref, wbig_ref, bbig_ref, wfh_ref,   # VMEM-resident inputs
                   c_ref, h_ref, m_ref):           # VMEM-resident outputs/state
  i = pl.program_id(0)
  M = MEM_DIM

  # Zero the state buffers once.  This also provides the zero "sentinel" row
  # used for padded / missing children (PyTorch leaf: child_c=child_h=zeros).
  @pl.when(i == 0)
  def _init():
    c_ref[...] = jnp.zeros_like(c_ref)
    h_ref[...] = jnp.zeros_like(h_ref)
    m_ref[...] = jnp.zeros_like(m_ref)

  x = x_ref[pl.ds(i, 1), :]                        # (1, IN_DIM)

  # Gather child states written by earlier grid steps (post-order => ready).
  rows_c, rows_h = [], []
  for k in range(MAX_CHILDREN):
    ci = cidx_ref[i * MAX_CHILDREN + k]            # SMEM scalar child index
    rows_c.append(c_ref[pl.ds(ci, 1), :])
    rows_h.append(h_ref[pl.ds(ci, 1), :])
  cc = jnp.concatenate(rows_c, axis=0)             # (MAX_CHILDREN, M)
  ch = jnp.concatenate(rows_h, axis=0)             # (MAX_CHILDREN, M)

  hsum = jnp.sum(ch, axis=0, keepdims=True)        # (1, M)

  # Fused matmul #1: iou (both cells) + fx (both f-gates) + type_query diff.
  lhs = jnp.concatenate([x, hsum], axis=1)         # (1, K_TOT)
  big = (jnp.dot(lhs, wbig_ref[...], preferred_element_type=jnp.float32)
         + bbig_ref[...])                          # (1, N_OUT)

  i_v = jax.nn.sigmoid(big[:, 0 * M:1 * M])
  o_v = jax.nn.sigmoid(big[:, 1 * M:2 * M])
  u_v = jnp.tanh(big[:, 2 * M:3 * M])
  i_l = jax.nn.sigmoid(big[:, 3 * M:4 * M])
  o_l = jax.nn.sigmoid(big[:, 4 * M:5 * M])
  u_l = jnp.tanh(big[:, 5 * M:6 * M])
  fx_both = big[:, 6 * M:8 * M]                    # (1, 2M)  [fx_vis | fx_lang]
  tq_diff = big[:, 8 * M:8 * M + 1]                # (1, 1)   logit_lang - logit_vis

  # Fused matmul #2: f-gates for both cells over all (padded) children.
  fh = jnp.dot(ch, wfh_ref[...], preferred_element_type=jnp.float32)  # (MC, 2M)
  f = jax.nn.sigmoid(fh + fx_both)                 # (MC, 2M)
  fc_v = jnp.sum(f[:, 0:M] * cc, axis=0, keepdims=True)
  fc_l = jnp.sum(f[:, M:2 * M] * cc, axis=0, keepdims=True)

  c_v = i_v * u_v + fc_v
  c_l = i_l * u_l + fc_l
  h_v = o_v * jnp.tanh(c_v)
  h_l = o_l * jnp.tanh(c_l)

  # type_query greedy select (eval mode): class 0 (lang) wins ties, as torch argmax.
  m0 = jnp.where(tq_diff >= 0.0, 1.0, 0.0)         # (1, 1)

  c_ref[pl.ds(i, 1), :] = m0 * c_l + (1.0 - m0) * c_v
  h_ref[pl.ds(i, 1), :] = m0 * h_l + (1.0 - m0) * h_v
  m_ref[pl.ds(i, 1), :] = jnp.broadcast_to(m0, (1, M))   # lane-dense mask row


@jax.jit
def uptree_forward_kernel(cidx, x_all, wbig, bbig, wfh):
  n = cidx.shape[0] // MAX_CHILDREN
  n_pad = x_all.shape[0]
  const = lambda i, cidx_ref: (0, 0)               # weights / state stay resident
  out_shape = tuple(
      jax.ShapeDtypeStruct((n_pad, MEM_DIM), jnp.float32) for _ in range(3))
  return pl.pallas_call(
      _uptree_kernel,
      out_shape=out_shape,
      grid_spec=pltpu.PrefetchScalarGridSpec(
          num_scalar_prefetch=1,
          grid=(n,),
          in_specs=[
              pl.BlockSpec((n_pad, IN_DIM), const),          # x (all nodes)
              pl.BlockSpec((K_TOT, N_OUT), const),           # fused weight
              pl.BlockSpec((1, N_OUT), const),               # fused bias
              pl.BlockSpec((MEM_DIM, 2 * MEM_DIM), const),   # fused fh weight
          ],
          out_specs=tuple(
              pl.BlockSpec((n_pad, MEM_DIM), const) for _ in range(3)),
      ),
      compiler_params=pltpu.CompilerParams(
          # Node axis is sequentially dependent (children feed parents).
          dimension_semantics=("arbitrary",)),
  )(cidx, x_all, wbig, bbig, wfh)


# --------------------------------------------------------------------------
# Parameter construction (mirrors nn.Linear default init) + fused packing
# --------------------------------------------------------------------------
def _linear(key, fan_in, fan_out):
  kw, kb = jax.random.split(key)
  bound = 1.0 / math.sqrt(fan_in)
  w = jax.random.uniform(kw, (fan_out, fan_in), jnp.float32, -bound, bound)
  b = jax.random.uniform(kb, (fan_out,), jnp.float32, -bound, bound)
  return w, b


def init_params(key):
  ks = jax.random.split(key, 9)
  raw = {}
  raw['wioux_v'], raw['bioux_v'] = _linear(ks[0], IN_DIM, 3 * MEM_DIM)
  raw['wiouh_v'], raw['biouh_v'] = _linear(ks[1], MEM_DIM, 3 * MEM_DIM)
  raw['wfx_v'], raw['bfx_v'] = _linear(ks[2], IN_DIM, MEM_DIM)
  raw['wfh_v'], raw['bfh_v'] = _linear(ks[3], MEM_DIM, MEM_DIM)
  raw['wioux_l'], raw['bioux_l'] = _linear(ks[4], IN_DIM, 3 * MEM_DIM)
  raw['wiouh_l'], raw['biouh_l'] = _linear(ks[5], MEM_DIM, 3 * MEM_DIM)
  raw['wfx_l'], raw['bfx_l'] = _linear(ks[6], IN_DIM, MEM_DIM)
  raw['wfh_l'], raw['bfh_l'] = _linear(ks[7], MEM_DIM, MEM_DIM)
  raw['wtq'], raw['btq'] = _linear(ks[8], IN_DIM, 2)
  return raw


def pack_params(raw):
  """Fuse vis+lang weights along N and x|hsum along K into one big matmul."""
  M = MEM_DIM
  wbig = jnp.zeros((K_TOT, N_OUT), jnp.float32)
  wbig = wbig.at[:IN_DIM, 0:3 * M].set(raw['wioux_v'].T)
  wbig = wbig.at[IN_DIM:, 0:3 * M].set(raw['wiouh_v'].T)
  wbig = wbig.at[:IN_DIM, 3 * M:6 * M].set(raw['wioux_l'].T)
  wbig = wbig.at[IN_DIM:, 3 * M:6 * M].set(raw['wiouh_l'].T)
  wbig = wbig.at[:IN_DIM, 6 * M:7 * M].set(raw['wfx_v'].T)
  wbig = wbig.at[:IN_DIM, 7 * M:8 * M].set(raw['wfx_l'].T)
  wbig = wbig.at[:IN_DIM, 8 * M].set(raw['wtq'][0] - raw['wtq'][1])

  bbig = jnp.zeros((1, N_OUT), jnp.float32)
  bbig = bbig.at[0, 0:3 * M].set(raw['bioux_v'] + raw['biouh_v'])
  bbig = bbig.at[0, 3 * M:6 * M].set(raw['bioux_l'] + raw['biouh_l'])
  bbig = bbig.at[0, 6 * M:7 * M].set(raw['bfx_v'] + raw['bfh_v'])
  bbig = bbig.at[0, 7 * M:8 * M].set(raw['bfx_l'] + raw['bfh_l'])
  bbig = bbig.at[0, 8 * M].set(raw['btq'][0] - raw['btq'][1])

  wfh_both = jnp.concatenate([raw['wfh_v'].T, raw['wfh_l'].T], axis=1)  # (M, 2M)
  return wbig, bbig, wfh_both


# --------------------------------------------------------------------------
# Tree glue (topology flattening stays in Python, math runs in ONE kernel)
# --------------------------------------------------------------------------
class Tree:
  def __init__(self, idx, children=()):
    self.idx = idx
    self.children = list(children)
    self.num_children = len(self.children)
    self.up_state = None
    self.type = None
    self.type_ = None


def _postorder(tree):
  order = []
  def visit(node):
    for c in node.children:
      visit(c)
    order.append(node)
  visit(tree)
  return order


def up_tree_forward(tree, inputs, packed_params):
  """Whole-tree forward with a single pallas_call and a single host sync."""
  wbig, bbig, wfh = packed_params
  nodes = _postorder(tree)
  n = len(nodes)
  n_pad = ((n + 1 + 7) // 8) * 8          # >= n+1 and a multiple of 8
  sentinel = n_pad - 1                     # permanently-zero state row

  proc = {id(node): p for p, node in enumerate(nodes)}
  cidx = np.full((n, MAX_CHILDREN), sentinel, np.int32)
  for p, node in enumerate(nodes):
    assert node.num_children <= MAX_CHILDREN, (
        f"node has {node.num_children} children > MAX_CHILDREN={MAX_CHILDREN}")
    for k, child in enumerate(node.children):
      cidx[p, k] = proc[id(child)]

  perm = np.array([node.idx for node in nodes], np.int32)
  x_all = jnp.zeros((n_pad, IN_DIM), jnp.float32).at[:n].set(inputs[perm])

  c_all, h_all, m_all = uptree_forward_kernel(
      jnp.asarray(cidx.reshape(-1)), x_all, wbig, bbig, wfh)

  # ONE device->host readback for all node type decisions (no per-node sync).
  m_host = np.asarray(m_all[:n, 0])
  for p, node in enumerate(nodes):
    m0 = float(m_host[p])
    node.type = jnp.asarray([[m0, 1.0 - m0]], jnp.float32)
    node.type_ = 'l' if (m0 != 0.0 or node.num_children == 0) else 'v'
    # TODO(synk): training-mode st_gumbel_softmax + nn.Dropout not implemented;
    # eval-mode (greedy one-hot select, identity dropout) semantics only.
    node.up_state = (c_all[p:p + 1], h_all[p:p + 1])
  return tree.up_state


# --------------------------------------------------------------------------
# Pure-JAX reference (mirrors the PyTorch recursion, eval mode)
# --------------------------------------------------------------------------
def _ref_cell(x, cc, ch, wx, bx, wh, bh, wfx, bfx, wfh, bfh):
  M = MEM_DIM
  hsum = jnp.sum(ch, axis=0, keepdims=True)
  iou = x @ wx.T + bx + hsum @ wh.T + bh
  i = jax.nn.sigmoid(iou[:, 0:M])
  o = jax.nn.sigmoid(iou[:, M:2 * M])
  u = jnp.tanh(iou[:, 2 * M:3 * M])
  f = jax.nn.sigmoid(ch @ wfh.T + bfh + x @ wfx.T + bfx)
  c = i * u + jnp.sum(f * cc, axis=0, keepdims=True)
  h = o * jnp.tanh(c)
  return c, h


def up_tree_forward_ref(tree, inputs, raw):
  for child in tree.children:
    up_tree_forward_ref(child, inputs, raw)
  if tree.num_children == 0:
    cc = jnp.zeros((1, MEM_DIM), jnp.float32)
    ch = jnp.zeros((1, MEM_DIM), jnp.float32)
  else:
    cc = jnp.concatenate([c.up_state[0] for c in tree.children], axis=0)
    ch = jnp.concatenate([c.up_state[1] for c in tree.children], axis=0)
  x = inputs[tree.idx:tree.idx + 1]
  c_v, h_v = _ref_cell(x, cc, ch, raw['wioux_v'], raw['bioux_v'],
                       raw['wiouh_v'], raw['biouh_v'],
                       raw['wfx_v'], raw['bfx_v'],
                       raw['wfh_v'], raw['bfh_v'])
  c_l, h_l = _ref_cell(x, cc, ch, raw['wioux_l'], raw['bioux_l'],
                       raw['wiouh_l'], raw['biouh_l'],
                       raw['wfx_l'], raw['bfx_l'],
                       raw['wfh_l'], raw['bfh_l'])
  logits = x @ raw['wtq'].T + raw['btq']
  m0 = jnp.where(logits[0, 0] >= logits[0, 1], 1.0, 0.0)
  c = m0 * c_l + (1.0 - m0) * c_v
  h = m0 * h_l + (1.0 - m0) * h_v
  tree.type = jnp.reshape(jnp.stack([m0, 1.0 - m0]), (1, 2))
  tree.type_ = 'l' if float(m0) else 'v'
  if tree.num_children == 0:
    tree.type_ = 'l'
  tree.up_state = (c, h)
  return tree.up_state


# --------------------------------------------------------------------------
if __name__ == "__main__":
  key = jax.random.PRNGKey(0)
  kp, kx = jax.random.split(key)

  raw = init_params(kp)
  packed = pack_params(raw)

  # Small 7-node tree:        0
  #                         / | \
  #                        1  2  3
  #                       /\      \
  #                      4  5      6
  def make_tree():
    return Tree(0, [Tree(1, [Tree(4), Tree(5)]), Tree(2), Tree(3, [Tree(6)])])

  tree_k = make_tree()
  tree_r = make_tree()

  num_nodes = 7
  inputs = jax.random.normal(kx, (num_nodes, IN_DIM), jnp.float32)

  c_k, h_k = up_tree_forward(tree_k, inputs, packed)
  c_k = jax.block_until_ready(c_k)
  h_k = jax.block_until_ready(h_k)

  c_r, h_r = up_tree_forward_ref(tree_r, inputs, raw)

  np.testing.assert_allclose(np.asarray(c_k), np.asarray(c_r),
                             rtol=2e-2, atol=2e-2)
  np.testing.assert_allclose(np.asarray(h_k), np.asarray(h_r),
                             rtol=2e-2, atol=2e-2)

  # Every node: type decision + hidden state must match the reference.
  for nk, nr in zip(_postorder(tree_k), _postorder(tree_r)):
    assert nk.type_ == nr.type_, (nk.idx, nk.type_, nr.type_)
    np.testing.assert_allclose(np.asarray(nk.up_state[1]),
                               np.asarray(nr.up_state[1]),
                               rtol=2e-2, atol=2e-2)

  assert c_k.shape == (1, MEM_DIM) and h_k.shape == (1, MEM_DIM)
  print("KERNEL_OK")
</pallas_src>

<mosaic_0001>
module attributes {stable_mosaic.version = 11 : i64} {
  func.func @_uptree_kernel(%arg0: i32, %arg1: memref<56xi32, #tpu.memory_space<smem>>, %arg2: memref<8x128xf32, #tpu.memory_space<vmem>>, %arg3: memref<256x1152xf32, #tpu.memory_space<vmem>>, %arg4: memref<1x1152xf32, #tpu.memory_space<vmem>>, %arg5: memref<128x256xf32, #tpu.memory_space<vmem>>, %arg6: memref<8x128xf32, #tpu.memory_space<vmem>>, %arg7: memref<8x128xf32, #tpu.memory_space<vmem>>, %arg8: memref<8x128xf32, #tpu.memory_space<vmem>>) attributes {dimension_semantics = [#tpu.dimension_semantics<arbitrary>], iteration_bounds = array<i64: 7>, scalar_prefetch = 1 : i64, scratch_operands = 0 : i64, tpu.core_type = #tpu.core_type<tc>, window_params = [{pipeline_mode = #tpu.pipeline_mode<synchronous>, transform_indices = @transform_0, window_bounds = array<i64: 8, 128>}, {pipeline_mode = #tpu.pipeline_mode<synchronous>, transform_indices = @transform_1, window_bounds = array<i64: 256, 1152>}, {pipeline_mode = #tpu.pipeline_mode<synchronous>, transform_indices = @transform_2, window_bounds = array<i64: 1, 1152>}, {pipeline_mode = #tpu.pipeline_mode<synchronous>, transform_indices = @transform_3, window_bounds = array<i64: 128, 256>}, {pipeline_mode = #tpu.pipeline_mode<synchronous>, transform_indices = @transform_4, window_bounds = array<i64: 8, 128>}, {pipeline_mode = #tpu.pipeline_mode<synchronous>, transform_indices = @transform_5, window_bounds = array<i64: 8, 128>}, {pipeline_mode = #tpu.pipeline_mode<synchronous>, transform_indices = @transform_6, window_bounds = array<i64: 8, 128>}]} {
    %c0_i32 = arith.constant 0 : i32
    %0 = arith.cmpi eq, %arg0, %c0_i32 : i32
    %1 = arith.extui %0 : i1 to i32
    %c0_i32_0 = arith.constant 0 : i32
    %2 = arith.cmpi ne, %1, %c0_i32_0 : i32
    scf.if %2 {
      %cst_48 = arith.constant 0.000000e+00 : f32
      %160 = vector.broadcast %cst_48 : f32 to vector<8x128xf32>
      %c0_49 = arith.constant 0 : index
      %c0_50 = arith.constant 0 : index
      %161 = vector.load %arg6[%c0_49, %c0_50] : memref<8x128xf32, #tpu.memory_space<vmem>>, vector<8x128xf32>
      tpu.vector_store %arg6[%c0_49, %c0_50], %160 {strides = array<i32>} : memref<8x128xf32, #tpu.memory_space<vmem>>, vector<8x128xf32>,
      %cst_51 = arith.constant 0.000000e+00 : f32
      %162 = vector.broadcast %cst_51 : f32 to vector<8x128xf32>
      %c0_52 = arith.constant 0 : index
      %c0_53 = arith.constant 0 : index
      %163 = vector.load %arg7[%c0_52, %c0_53] : memref<8x128xf32, #tpu.memory_space<vmem>>, vector<8x128xf32>
      tpu.vector_store %arg7[%c0_52, %c0_53], %162 {strides = array<i32>} : memref<8x128xf32, #tpu.memory_space<vmem>>, vector<8x128xf32>,
      %cst_54 = arith.constant 0.000000e+00 : f32
      %164 = vector.broadcast %cst_54 : f32 to vector<8x128xf32>
      %c0_55 = arith.constant 0 : index
      %c0_56 = arith.constant 0 : index
      %165 = vector.load %arg8[%c0_55, %c0_56] : memref<8x128xf32, #tpu.memory_space<vmem>>, vector<8x128xf32>
      tpu.vector_store %arg8[%c0_55, %c0_56], %164 {strides = array<i32>} : memref<8x128xf32, #tpu.memory_space<vmem>>, vector<8x128xf32>,
    } else {
    }
    %3 = arith.index_cast %arg0 : i32 to index
    %c0 = arith.constant 0 : index
    %4 = vector.load %arg2[%3, %c0] : memref<8x128xf32, #tpu.memory_space<vmem>>, vector<1x128xf32>
    %c8_i32 = arith.constant 8 : i32
    %5 = arith.muli %arg0, %c8_i32 : i32
    %c0_i32_1 = arith.constant 0 : i32
    %6 = arith.addi %5, %c0_i32_1 : i32
    %7 = arith.index_cast %6 : i32 to index
    %8 = memref.load %arg1[%7] : memref<56xi32, #tpu.memory_space<smem>>
    %9 = arith.index_cast %8 : i32 to index
    %c0_2 = arith.constant 0 : index
    %10 = vector.load %arg6[%9, %c0_2] : memref<8x128xf32, #tpu.memory_space<vmem>>, vector<1x128xf32>
    %11 = arith.index_cast %8 : i32 to index
    %c0_3 = arith.constant 0 : index
    %12 = vector.load %arg7[%11, %c0_3] : memref<8x128xf32, #tpu.memory_space<vmem>>, vector<1x128xf32>
    %c8_i32_4 = arith.constant 8 : i32
    %13 = arith.muli %arg0, %c8_i32_4 : i32
    %c1_i32 = arith.constant 1 : i32
    %14 = arith.addi %13, %c1_i32 : i32
    %15 = arith.index_cast %14 : i32 to index
    %16 = memref.load %arg1[%15] : memref<56xi32, #tpu.memory_space<smem>>
    %17 = arith.index_cast %16 : i32 to index
    %c0_5 = arith.constant 0 : index
    %18 = vector.load %arg6[%17, %c0_5] : memref<8x128xf32, #tpu.memory_space<vmem>>, vector<1x128xf32>
    %19 = arith.index_cast %16 : i32 to index
    %c0_6 = arith.constant 0 : index
    %20 = vector.load %arg7[%19, %c0_6] : memref<8x128xf32, #tpu.memory_space<vmem>>, vector<1x128xf32>
    %c8_i32_7 = arith.constant 8 : i32
    %21 = arith.muli %arg0, %c8_i32_7 : i32
    %c2_i32 = arith.constant 2 : i32
    %22 = arith.addi %21, %c2_i32 : i32
    %23 = arith.index_cast %22 : i32 to index
    %24 = memref.load %arg1[%23] : memref<56xi32, #tpu.memory_space<smem>>
    %25 = arith.index_cast %24 : i32 to index
    %c0_8 = arith.constant 0 : index
    %26 = vector.load %arg6[%25, %c0_8] : memref<8x128xf32, #tpu.memory_space<vmem>>, vector<1x128xf32>
    %27 = arith.index_cast %24 : i32 to index
    %c0_9 = arith.constant 0 : index
    %28 = vector.load %arg7[%27, %c0_9] : memref<8x128xf32, #tpu.memory_space<vmem>>, vector<1x128xf32>
    %c8_i32_10 = arith.constant 8 : i32
    %29 = arith.muli %arg0, %c8_i32_10 : i32
    %c3_i32 = arith.constant 3 : i32
    %30 = arith.addi %29, %c3_i32 : i32
    %31 = arith.index_cast %30 : i32 to index
    %32 = memref.load %arg1[%31] : memref<56xi32, #tpu.memory_space<smem>>
    %33 = arith.index_cast %32 : i32 to index
    %c0_11 = arith.constant 0 : index
    %34 = vector.load %arg6[%33, %c0_11] : memref<8x128xf32, #tpu.memory_space<vmem>>, vector<1x128xf32>
    %35 = arith.index_cast %32 : i32 to index
    %c0_12 = arith.constant 0 : index
    %36 = vector.load %arg7[%35, %c0_12] : memref<8x128xf32, #tpu.memory_space<vmem>>, vector<1x128xf32>
    %c8_i32_13 = arith.constant 8 : i32
    %37 = arith.muli %arg0, %c8_i32_13 : i32
    %c4_i32 = arith.constant 4 : i32
    %38 = arith.addi %37, %c4_i32 : i32
    %39 = arith.index_cast %38 : i32 to index
    %40 = memref.load %arg1[%39] : memref<56xi32, #tpu.memory_space<smem>>
    %41 = arith.index_cast %40 : i32 to index
    %c0_14 = arith.constant 0 : index
    %42 = vector.load %arg6[%41, %c0_14] : memref<8x128xf32, #tpu.memory_space<vmem>>, vector<1x128xf32>
    %43 = arith.index_cast %40 : i32 to index
    %c0_15 = arith.constant 0 : index
    %44 = vector.load %arg7[%43, %c0_15] : memref<8x128xf32, #tpu.memory_space<vmem>>, vector<1x128xf32>
    %c8_i32_16 = arith.constant 8 : i32
    %45 = arith.muli %arg0, %c8_i32_16 : i32
    %c5_i32 = arith.constant 5 : i32
    %46 = arith.addi %45, %c5_i32 : i32
    %47 = arith.index_cast %46 : i32 to index
    %48 = memref.load %arg1[%47] : memref<56xi32, #tpu.memory_space<smem>>
    %49 = arith.index_cast %48 : i32 to index
    %c0_17 = arith.constant 0 : index
    %50 = vector.load %arg6[%49, %c0_17] : memref<8x128xf32, #tpu.memory_space<vmem>>, vector<1x128xf32>
    %51 = arith.index_cast %48 : i32 to index
    %c0_18 = arith.constant 0 : index
    %52 = vector.load %arg7[%51, %c0_18] : memref<8x128xf32, #tpu.memory_space<vmem>>, vector<1x128xf32>
    %c8_i32_19 = arith.constant 8 : i32
    %53 = arith.muli %arg0, %c8_i32_19 : i32
    %c6_i32 = arith.constant 6 : i32
    %54 = arith.addi %53, %c6_i32 : i32
    %55 = arith.index_cast %54 : i32 to index
    %56 = memref.load %arg1[%55] : memref<56xi32, #tpu.memory_space<smem>>
    %57 = arith.index_cast %56 : i32 to index
    %c0_20 = arith.constant 0 : index
    %58 = vector.load %arg6[%57, %c0_20] : memref<8x128xf32, #tpu.memory_space<vmem>>, vector<1x128xf32>
    %59 = arith.index_cast %56 : i32 to index
    %c0_21 = arith.constant 0 : index
    %60 = vector.load %arg7[%59, %c0_21] : memref<8x128xf32, #tpu.memory_space<vmem>>, vector<1x128xf32>
    %c8_i32_22 = arith.constant 8 : i32
    %61 = arith.muli %arg0, %c8_i32_22 : i32
    %c7_i32 = arith.constant 7 : i32
    %62 = arith.addi %61, %c7_i32 : i32
    %63 = arith.index_cast %62 : i32 to index
    %64 = memref.load %arg1[%63] : memref<56xi32, #tpu.memory_space<smem>>
    %65 = arith.index_cast %64 : i32 to index
    %c0_23 = arith.constant 0 : index
    %66 = vector.load %arg6[%65, %c0_23] : memref<8x128xf32, #tpu.memory_space<vmem>>, vector<1x128xf32>
    %67 = arith.index_cast %64 : i32 to index
    %c0_24 = arith.constant 0 : index
    %68 = vector.load %arg7[%67, %c0_24] : memref<8x128xf32, #tpu.memory_space<vmem>>, vector<1x128xf32>
    %69 = tpu.concatenate %10, %18, %26, %34, %42, %50, %58, %66 in 0 : vector<1x128xf32>, vector<1x128xf32>, vector<1x128xf32>, vector<1x128xf32>, vector<1x128xf32>, vector<1x128xf32>, vector<1x128xf32>, vector<1x128xf32> -> vector<8x128xf32>
    %70 = tpu.concatenate %12, %20, %28, %36, %44, %52, %60, %68 in 0 : vector<1x128xf32>, vector<1x128xf32>, vector<1x128xf32>, vector<1x128xf32>, vector<1x128xf32>, vector<1x128xf32>, vector<1x128xf32>, vector<1x128xf32> -> vector<8x128xf32>
    %cst = arith.constant dense<0.000000e+00> : vector<128xf32>
    %71 = vector.multi_reduction <add>, %70, %cst [0] : vector<8x128xf32> to vector<128xf32>
    %72 = vector.shape_cast %71 : vector<128xf32> to vector<1x128xf32>
    %73 = tpu.concatenate %4, %72 in 1 : vector<1x128xf32>, vector<1x128xf32> -> vector<1x256xf32>
    %c0_25 = arith.constant 0 : index
    %c0_26 = arith.constant 0 : index
    %74 = vector.load %arg3[%c0_25, %c0_26] : memref<256x1152xf32, #tpu.memory_space<vmem>>, vector<256x1152xf32>
    %cst_27 = arith.constant dense<0.000000e+00> : vector<1x1152xf32>
    %75 = tpu.matmul %73, %74, %cst_27 {dimension_numbers = #tpu.dot_dimension_numbers<[1], [0], [0], [1], [0, 0, 1, 1], [], []>} : vector<1x256xf32>, vector<256x1152xf32>, vector<1x1152xf32> -> vector<1x1152xf32>
    %c0_28 = arith.constant 0 : index
    %c0_29 = arith.constant 0 : index
    %76 = vector.load %arg4[%c0_28, %c0_29] : memref<1x1152xf32, #tpu.memory_space<vmem>>, vector<1x1152xf32>
    %77 = arith.addf %75, %76 : vector<1x1152xf32>
    %78 = vector.extract_strided_slice %77 {offsets = [0, 0], sizes = [1, 128], strides = [1, 1]} : vector<1x1152xf32> to vector<1x128xf32>
    %79 = arith.negf %78 : vector<1x128xf32>
    %80 = math.exp %79 : vector<1x128xf32>
    %cst_30 = arith.constant 1.000000e+00 : f32
    %81 = vector.broadcast %cst_30 : f32 to vector<1x128xf32>
    %82 = arith.addf %81, %80 : vector<1x128xf32>
    %83 = arith.divf %81, %82 : vector<1x128xf32>
    %84 = vector.extract_strided_slice %77 {offsets = [0, 128], sizes = [1, 128], strides = [1, 1]} : vector<1x1152xf32> to vector<1x128xf32>
    %85 = arith.negf %84 : vector<1x128xf32>
    %86 = math.exp %85 : vector<1x128xf32>
    %cst_31 = arith.constant 1.000000e+00 : f32
    %87 = vector.broadcast %cst_31 : f32 to vector<1x128xf32>
    %88 = arith.addf %87, %86 : vector<1x128xf32>
    %89 = arith.divf %87, %88 : vector<1x128xf32>
    %90 = vector.extract_strided_slice %77 {offsets = [0, 256], sizes = [1, 128], strides = [1, 1]} : vector<1x1152xf32> to vector<1x128xf32>
    %91 = math.tanh %90 : vector<1x128xf32>
    %92 = vector.extract_strided_slice %77 {offsets = [0, 384], sizes = [1, 128], strides = [1, 1]} : vector<1x1152xf32> to vector<1x128xf32>
    %93 = arith.negf %92 : vector<1x128xf32>
    %94 = math.exp %93 : vector<1x128xf32>
    %cst_32 = arith.constant 1.000000e+00 : f32
    %95 = vector.broadcast %cst_32 : f32 to vector<1x128xf32>
    %96 = arith.addf %95, %94 : vector<1x128xf32>
    %97 = arith.divf %95, %96 : vector<1x128xf32>
    %98 = vector.extract_strided_slice %77 {offsets = [0, 512], sizes = [1, 128], strides = [1, 1]} : vector<1x1152xf32> to vector<1x128xf32>
    %99 = arith.negf %98 : vector<1x128xf32>
    %100 = math.exp %99 : vector<1x128xf32>
    %cst_33 = arith.constant 1.000000e+00 : f32
    %101 = vector.broadcast %cst_33 : f32 to vector<1x128xf32>
    %102 = arith.addf %101, %100 : vector<1x128xf32>
    %103 = arith.divf %101, %102 : vector<1x128xf32>
    %104 = vector.extract_strided_slice %77 {offsets = [0, 640], sizes = [1, 128], strides = [1, 1]} : vector<1x1152xf32> to vector<1x128xf32>
    %105 = math.tanh %104 : vector<1x128xf32>
    %106 = vector.extract_strided_slice %77 {offsets = [0, 768], sizes = [1, 256], strides = [1, 1]} : vector<1x1152xf32> to vector<1x256xf32>
    %107 = vector.extract_strided_slice %77 {offsets = [0, 1024], sizes = [1, 1], strides = [1, 1]} : vector<1x1152xf32> to vector<1x1xf32>
    %c0_34 = arith.constant 0 : index
    %c0_35 = arith.constant 0 : index
    %108 = vector.load %arg5[%c0_34, %c0_35] : memref<128x256xf32, #tpu.memory_space<vmem>>, vector<128x256xf32>
    %cst_36 = arith.constant dense<0.000000e+00> : vector<8x256xf32>
    %109 = tpu.matmul %70, %108, %cst_36 {dimension_numbers = #tpu.dot_dimension_numbers<[1], [0], [0], [1], [0, 0, 1, 1], [], []>} : vector<8x128xf32>, vector<128x256xf32>, vector<8x256xf32> -> vector<8x256xf32>
    %110 = vector.broadcast %106 : vector<1x256xf32> to vector<8x256xf32>
    %111 = arith.addf %109, %110 : vector<8x256xf32>
    %112 = arith.negf %111 : vector<8x256xf32>
    %113 = math.exp %112 : vector<8x256xf32>
    %cst_37 = arith.constant 1.000000e+00 : f32
    %114 = vector.broadcast %cst_37 : f32 to vector<8x256xf32>
    %115 = arith.addf %114, %113 : vector<8x256xf32>
    %116 = arith.divf %114, %115 : vector<8x256xf32>
    %117 = vector.extract_strided_slice %116 {offsets = [0, 0], sizes = [8, 128], strides = [1, 1]} : vector<8x256xf32> to vector<8x128xf32>
    %118 = arith.mulf %117, %69 : vector<8x128xf32>
    %cst_38 = arith.constant dense<0.000000e+00> : vector<128xf32>
    %119 = vector.multi_reduction <add>, %118, %cst_38 [0] : vector<8x128xf32> to vector<128xf32>
    %120 = vector.shape_cast %119 : vector<128xf32> to vector<1x128xf32>
    %121 = vector.extract_strided_slice %116 {offsets = [0, 128], sizes = [8, 128], strides = [1, 1]} : vector<8x256xf32> to vector<8x128xf32>
    %122 = arith.mulf %121, %69 : vector<8x128xf32>
    %cst_39 = arith.constant dense<0.000000e+00> : vector<128xf32>
    %123 = vector.multi_reduction <add>, %122, %cst_39 [0] : vector<8x128xf32> to vector<128xf32>
    %124 = vector.shape_cast %123 : vector<128xf32> to vector<1x128xf32>
    %125 = arith.mulf %83, %91 : vector<1x128xf32>
    %126 = arith.addf %125, %120 : vector<1x128xf32>
    %127 = arith.mulf %97, %105 : vector<1x128xf32>
    %128 = arith.addf %127, %124 : vector<1x128xf32>
    %129 = math.tanh %126 : vector<1x128xf32>
    %130 = arith.mulf %89, %129 : vector<1x128xf32>
    %131 = math.tanh %128 : vector<1x128xf32>
    %132 = arith.mulf %103, %131 : vector<1x128xf32>
    %cst_40 = arith.constant 0.000000e+00 : f32
    %133 = vector.broadcast %cst_40 : f32 to vector<1x1xf32>
    %134 = arith.cmpf oge, %107, %133 : vector<1x1xf32>
    %cst_41 = arith.constant 1.000000e+00 : f32
    %cst_42 = arith.constant 0.000000e+00 : f32
    %135 = vector.broadcast %cst_41 : f32 to vector<1x1xf32>
    %136 = vector.broadcast %cst_42 : f32 to vector<1x1xf32>
    %137 = arith.select %134, %135, %136 : vector<1x1xi1>, vector<1x1xf32>
    %138 = vector.broadcast %137 : vector<1x1xf32> to vector<1x128xf32>
    %139 = arith.mulf %138, %128 : vector<1x128xf32>
    %cst_43 = arith.constant 1.000000e+00 : f32
    %140 = vector.broadcast %cst_43 : f32 to vector<1x1xf32>
    %141 = arith.subf %140, %137 : vector<1x1xf32>
    %142 = vector.broadcast %141 : vector<1x1xf32> to vector<1x128xf32>
    %143 = arith.mulf %142, %126 : vector<1x128xf32>
    %144 = arith.addf %139, %143 : vector<1x128xf32>
    %145 = arith.index_cast %arg0 : i32 to index
    %c0_44 = arith.constant 0 : index
    %146 = vector.load %arg6[%145, %c0_44] : memref<8x128xf32, #tpu.memory_space<vmem>>, vector<1x128xf32>
    tpu.vector_store %arg6[%145, %c0_44], %144 {strides = array<i32>} : memref<8x128xf32, #tpu.memory_space<vmem>>, vector<1x128xf32>,
    %147 = vector.broadcast %137 : vector<1x1xf32> to vector<1x128xf32>
    %148 = arith.mulf %147, %132 : vector<1x128xf32>
    %cst_45 = arith.constant 1.000000e+00 : f32
    %149 = vector.broadcast %cst_45 : f32 to vector<1x1xf32>
    %150 = arith.subf %149, %137 : vector<1x1xf32>
    %151 = vector.broadcast %150 : vector<1x1xf32> to vector<1x128xf32>
    %152 = arith.mulf %151, %130 : vector<1x128xf32>
    %153 = arith.addf %148, %152 : vector<1x128xf32>
    %154 = arith.index_cast %arg0 : i32 to index
    %c0_46 = arith.constant 0 : index
    %155 = vector.load %arg7[%154, %c0_46] : memref<8x128xf32, #tpu.memory_space<vmem>>, vector<1x128xf32>
    tpu.vector_store %arg7[%154, %c0_46], %153 {strides = array<i32>} : memref<8x128xf32, #tpu.memory_space<vmem>>, vector<1x128xf32>,
    %156 = vector.shape_cast %137 : vector<1x1xf32> to vector<1x1xf32>
    %157 = vector.broadcast %156 : vector<1x1xf32> to vector<1x128xf32>
    %158 = arith.index_cast %arg0 : i32 to index
    %c0_47 = arith.constant 0 : index
    %159 = vector.load %arg8[%158, %c0_47] : memref<8x128xf32, #tpu.memory_space<vmem>>, vector<1x128xf32>
    tpu.vector_store %arg8[%158, %c0_47], %157 {strides = array<i32>} : memref<8x128xf32, #tpu.memory_space<vmem>>, vector<1x128xf32>,
    return
  }
  func.func @transform_0(%arg0: i32, %arg1: memref<56xi32, #tpu.memory_space<smem>>) -> (i32, i32) {
    %c0_i32 = arith.constant 0 : i32
    %c0_i32_0 = arith.constant 0 : i32
    %c0_i32_1 = arith.constant 0 : i32
    return %c0_i32, %c0_i32_0 : i32, i32
  }
  func.func @transform_1(%arg0: i32, %arg1: memref<56xi32, #tpu.memory_space<smem>>) -> (i32, i32) {
    %c0_i32 = arith.constant 0 : i32
    %c0_i32_0 = arith.constant 0 : i32
    %c0_i32_1 = arith.constant 0 : i32
    return %c0_i32, %c0_i32_0 : i32, i32
  }
  func.func @transform_2(%arg0: i32, %arg1: memref<56xi32, #tpu.memory_space<smem>>) -> (i32, i32) {
    %c0_i32 = arith.constant 0 : i32
    %c0_i32_0 = arith.constant 0 : i32
    %c0_i32_1 = arith.constant 0 : i32
    return %c0_i32, %c0_i32_0 : i32, i32
  }
  func.func @transform_3(%arg0: i32, %arg1: memref<56xi32, #tpu.memory_space<smem>>) -> (i32, i32) {
    %c0_i32 = arith.constant 0 : i32
    %c0_i32_0 = arith.constant 0 : i32
    %c0_i32_1 = arith.constant 0 : i32
    return %c0_i32, %c0_i32_0 : i32, i32
  }
  func.func @transform_4(%arg0: i32, %arg1: memref<56xi32, #tpu.memory_space<smem>>) -> (i32, i32) {
    %c0_i32 = arith.constant 0 : i32
    %c0_i32_0 = arith.constant 0 : i32
    %c0_i32_1 = arith.constant 0 : i32
    return %c0_i32, %c0_i32_0 : i32, i32
  }
  func.func @transform_5(%arg0: i32, %arg1: memref<56xi32, #tpu.memory_space<smem>>) -> (i32, i32) {
    %c0_i32 = arith.constant 0 : i32
    %c0_i32_0 = arith.constant 0 : i32
    %c0_i32_1 = arith.constant 0 : i32
    return %c0_i32, %c0_i32_0 : i32, i32
  }
  func.func @transform_6(%arg0: i32, %arg1: memref<56xi32, #tpu.memory_space<smem>>) -> (i32, i32) {
    %c0_i32 = arith.constant 0 : i32
    %c0_i32_0 = arith.constant 0 : i32
    %c0_i32_1 = arith.constant 0 : i32
    return %c0_i32, %c0_i32_0 : i32, i32
  }
}

</mosaic_0001>

<bundles_post_ra>
// kernel: uptree_forward_kernel.1
= control target key start
LH: loop header
LB: loop body
LE: loop exit
PB: predicated region body
PF: predicated region fallthrough
CT: control target
= control target key end

     0   :  { %s2575_s0 = inlined_call_operand.hbm [shape: s32[56], index: 0, kind: input, shape index: {}]   ;;  %s2576_s1 = inlined_call_operand.hbm [shape: f32[8,128], index: 1, kind: input, shape index: {}]   ;;  %s2577_s2 = inlined_call_operand.hbm [shape: f32[256,1152], index: 2, kind: input, shape index: {}]   ;;  %s2578_s3 = inlined_call_operand.hbm [shape: f32[1,1152], index: 3, kind: input, shape index: {}]   ;;  %s2579_s4 = inlined_call_operand.hbm [shape: f32[128,256], index: 4, kind: input, shape index: {}]   ;;  %s2580_s5 = inlined_call_operand.hbm [shape: f32[8,128], index: 5, kind: output, shape index: {0}]   ;;  %s2581_s6 = inlined_call_operand.hbm [shape: f32[8,128], index: 6, kind: output, shape index: {1}]   ;;  %s2582_s7 = inlined_call_operand.hbm [shape: f32[8,128], index: 7, kind: output, shape index: {2}]  }
   0x1   :  { %s1935_s26 = scalar_lea.hbm %s2575_s0, 16 }
   0x2   :  { %p1936_p0 = scmp.ne.s32.totalorder %s2575_s0, %s1935_s26  ;;  %p1939_p1 = scmp.lt.u32.totalorder %s1935_s26, %s2575_s0 }
   0x4   :  { %p1941_p2 = pnand %p1939_p1, %p1936_p0 }
   0x6   :  { %1944 = shalt.err (!%p1941_p2)  }
   0x7   :  { %s2165_s8 = smov [#allocation3]  }
   0x8   :  { %14 = dma.hbm_to_smem %s2575_s0, 16, %s2165_s8, [#allocation2] }
   0x9   :  { %2139 = dma.done.wait [#allocation2], 16 }
   0xa   :  { %2140 = vsyncadd [#allocation2], 4294967280 }
   0xb   :  { %16 = sfence }
   0xc   :  { %17 = vsyncpa [#allocation5], 0 }
   0xd   :  { %18 = vsyncpa [#allocation8], 0 }
   0xe   :  { %19 = vsyncpa [#allocation11], 0 }
   0xf   :  { %20 = vsyncpa [#allocation6], 0 }
  0x10   :  { %21 = vsyncpa [#allocation14], 0  ;;  %s2232_s11 = smov 0  }
  0x11 LB: > { %s2166_s12 = smov [#allocation7]   ;;  %s2238_s13 = sadd.s32 4294967295, %s2163_s11   ;;  %s2163_s11 = sphi %s2232_s11, %s27_s11  }
  0x12   : > { %s202_s0 = sshll.u32 %s2166_s12, 4  ;;  %p1426_p3 = scmp.ge.s32.totalorder %s2163_s11, 1  ;;  %s2244_s0 = int_to_ptr.vmem [resolvable:$true] %s202_s0 }
  0x13   : > { %p179_p4 = scmp.lt.s32.totalorder %s2163_s11, 8  ;;  %p2583_p6 = scmp.eq.s32.totalorder %s2238_s13, 0 }
  0x14   : > { %s2167_s15 = smov [#allocation4]   ;;  %s2168_s18 = smov [#allocation9]  }
  0x15   : > { %p2246_p7 = pnand %p1426_p3, %p179_p4  ;;  %s192_s16 = sshll.u32 %s2167_s15, 4  ;;  %s2252_s16 = int_to_ptr.vmem [resolvable:$true] %s192_s16 }
  0x16   : > { %s216_s19 = sshll.u32 %s2168_s18, 4  ;;  %s2169_s20 = smov [#allocation10]   ;;  %s2260_s19 = int_to_ptr.vmem [resolvable:$true] %s216_s19 }
  0x17   : > { %s2585_s14 = scalar_select %p2246_p7, 1, 0 }
  0x18   : > { %p1852_p8 = pneg %p2246_p7  ;;  %s2262_s21 = sshll.u32 %s2169_s20, 4  ;;  %s227_s21 = int_to_ptr.vmem [resolvable:$true] %s2262_s21 }
  0x19   : > { %s1945_s24 = scalar_lea.hbm %s2577_s2, 36864 }
  0x1a   : > { %p2256_p9 = pnand %p2583_p6, %p1852_p8  ;;  %p1946_p10 = scmp.ne.s32.totalorder %s2577_s2, %s1945_s24 }
  0x1b   : > { %p1952_p0 = scmp.lt.u32.totalorder %s1945_s24, %s2577_s2 }
  0x1c   : > { %p2272_p11 = pneg %p2256_p9 }
  0x1e   : > { %p1948_p12 = pnand %p2272_p11, %p1946_p10 }
  0x20   : > { %p1949_p13 = pneg %p1948_p12 }
  0x22   : > { %p1954_p1 = pnand %p1952_p0, %p1949_p13 }
  0x24   : > { %1957 = shalt.err (!%p1954_p1)
}
  0x25   : > { %s1958_s30 = scalar_lea.vmem %s2244_s0, 36864  ;;  %p1966_p8 = scmp.lt.s32.totalorder %s2244_s0, %s2244_s0 }
  0x26   : > { %p1959_p2 = scmp.ne.s32.totalorder %s2244_s0, %s1958_s30  ;;  %p1967_p5 = scmp.lt.s32.totalorder %s1958_s30, %s1958_s30 }
  0x28   : > { %p1961_p3 = pnand %p1959_p2, %p2272_p11  ;;  %p1968_p10 = por %p1967_p5, %p1966_p8 }
  0x2a   : > { %p1962_p4 = pneg %p1961_p3 }
  0x2c   : > { %p1969_p12 = pnand %p1968_p10, %p1962_p4 }
  0x2e   : > { %1972 = shalt.err (!%p1969_p12)
}
  0x2f   : > { %s2170_s8 = smov 1152   ;;  %s2171_s9 = smov 72  }
  0x30   : > { %1858 = dma.hbm_to_vmem [thread:$0]  (!%p2256_p9), %s2577_s2, 36864, %s2244_s0, [#allocation8], %s2170_s8, %s2170_s8, %s2171_s9  }
  0x31   : > { %s1973_s20 = scalar_lea.hbm %s2576_s1, 128 }
  0x32   : > { %p1974_p5 = scmp.ne.s32.totalorder %s2576_s1, %s1973_s20  ;;  %p1980_p1 = scmp.lt.u32.totalorder %s1973_s20, %s2576_s1 }
  0x34   : > { %p1976_p13 = pnand %p1974_p5, %p2272_p11 }
  0x36   : > { %p1977_p0 = pneg %p1976_p13 }
  0x38   : > { %p1982_p2 = pnand %p1980_p1, %p1977_p0 }
  0x3a   : > { %1985 = shalt.err (!%p1982_p2)
}
  0x3b   : > { %s1986_s0 = scalar_lea.vmem %s2252_s16, 128  ;;  %p1994_p10 = scmp.lt.s32.totalorder %s2252_s16, %s2252_s16 }
  0x3c   : > { %p1987_p3 = scmp.ne.s32.totalorder %s2252_s16, %s1986_s0  ;;  %p1995_p12 = scmp.lt.s32.totalorder %s1986_s0, %s1986_s0 }
  0x3e   : > { %p1989_p4 = pnand %p1987_p3, %p2272_p11  ;;  %p1996_p5 = por %p1995_p12, %p1994_p10 }
  0x40   : > { %p1990_p8 = pneg %p1989_p4 }
  0x42   : > { %p1997_p13 = pnand %p1996_p5, %p1990_p8 }
  0x44   : > { %2000 = shalt.err (!%p1997_p13)
}
  0x45   : > { %1855 = dma.hbm_to_vmem [thread:$0]  (!%p2256_p9), %s2576_s1, 128, %s2252_s16, [#allocation5]  }
  0x46   : > { %s2001_s8 = scalar_lea.hbm %s2578_s3, 144 }
  0x47   : > { %p2002_p0 = scmp.ne.s32.totalorder %s2578_s3, %s2001_s8  ;;  %p2008_p3 = scmp.lt.u32.totalorder %s2001_s8, %s2578_s3 }
  0x49   : > { %p2004_p1 = pnand %p2002_p0, %p2272_p11 }
  0x4b   : > { %p2005_p2 = pneg %p2004_p1 }
  0x4d   : > { %p2010_p4 = pnand %p2008_p3, %p2005_p2 }
  0x4f   : > { %2013 = shalt.err (!%p2010_p4)
}
  0x50   : > { %s2014_s16 = scalar_lea.vmem %s2260_s19, 144  ;;  %s2021_s18 = scalar_lea.vmem %s2260_s19, 160 }
  0x51   : > { %p2015_p8 = scmp.ne.s32.totalorder %s2260_s19, %s2014_s16  ;;  %p2022_p5 = scmp.lt.s32.totalorder %s2260_s19, %s2260_s19 }
  0x52   : > { %p2023_p13 = scmp.lt.s32.totalorder %s2021_s18, %s2014_s16 }
  0x53   : > { %p2017_p10 = pnand %p2015_p8, %p2272_p11 }
  0x54   : > { %p2024_p0 = por %p2023_p13, %p2022_p5 }
  0x55   : > { %p2018_p12 = pneg %p2017_p10 }
  0x57   : > { %p2025_p1 = pnand %p2024_p0, %p2018_p12 }
  0x59   : > { %2028 = shalt.err (!%p2025_p1)
}
  0x5a   : > { %1861 = dma.hbm_to_vmem [thread:$0]  (!%p2256_p9), %s2578_s3, 144, %s2260_s19, [#allocation8]  }
  0x5b   : > { %s2029_s25 = scalar_lea.hbm %s2579_s4, 4096 }
  0x5c   : > { %p2030_p2 = scmp.ne.s32.totalorder %s2579_s4, %s2029_s25  ;;  %p2036_p8 = scmp.lt.u32.totalorder %s2029_s25, %s2579_s4 }
  0x5e   : > { %p2032_p3 = pnand %p2030_p2, %p2272_p11 }
  0x60   : > { %p2033_p4 = pneg %p2032_p3 }
  0x62   : > { %p2038_p10 = pnand %p2036_p8, %p2033_p4 }
  0x64   : > { %2041 = shalt.err (!%p2038_p10)
}
  0x65   : > { %s2042_s30 = scalar_lea.vmem %s227_s21, 4096  ;;  %p2050_p0 = scmp.lt.s32.totalorder %s227_s21, %s227_s21 }
  0x66   : > { %p2043_p12 = scmp.ne.s32.totalorder %s227_s21, %s2042_s30  ;;  %p2051_p1 = scmp.lt.s32.totalorder %s2042_s30, %s2042_s30 }
  0x68   : > { %p2045_p5 = pnand %p2043_p12, %p2272_p11  ;;  %p2052_p6 = por %p2051_p1, %p2050_p0 }
  0x6a   : > { %p2046_p13 = pneg %p2045_p5 }
  0x6c   : > { %p2053_p7 = pnand %p2052_p6, %p2046_p13 }
  0x6e   : > { %2056 = shalt.err (!%p2053_p7)
}
  0x6f   : > { %s2172_s19 = smov 256   ;;  %s2173_s8 = smov 16  }
  0x70   : > { %1864 = dma.hbm_to_vmem [thread:$0]  (!%p2256_p9), %s2579_s4, 4096, %s227_s21, [#allocation11], %s2172_s19, %s2172_s19, %s2173_s8  }
  0x71   : > { %p2588_p2 = scmp.ne.s32.totalorder %s2585_s14, 0 }
  0x72   : > { %p2589_p3 = scmp.eq.s32.totalorder (!%p2588_p2), %s2238_s13, 0 }
  0x73   : > { %242 = sbr.rel (%p2588_p2) target bundleno = 716 (0x2cc), region = 36 }
  0x7a   : > { %2142 = dma.done.wait (%p2589_p3), [#allocation5], 128   ;;  %p2590_p11 = pmov %p2589_p3 }
  0x7b   : > { %p2591_p6 = pmov %p2589_p3 }
  0x7c   : > { %2144 = vsyncadd (%p2590_p11), [#allocation5], 4294967168 }
  0x7d   : > { %2146 = dma.done.wait (%p2591_p6), [#allocation8], 37008   ;;  %p2592_p7 = pmov %p2589_p3 }
  0x7e   : > { %p2593_p4 = pmov %p2589_p3 }
  0x7f   : > { %2148 = vsyncadd (%p2592_p7), [#allocation8], 4294930288 }
  0x80   : > { %2150 = dma.done.wait (%p2593_p4), [#allocation11], 4096   ;;  %p2594_p9 = pmov %p2589_p3 }
  0x81   : > { %p2595_p8 = scmp.ne.s32.totalorder %s2238_s13, 0 }
  0x82   : > { %2152 = vsyncadd (%p2594_p9), [#allocation11], 4294963200  ;;  %v2174_v0 = vmov (!%p2595_p8), 0.0  }
  0x83   : > { %277 = sbr.rel (%p2595_p8) target bundleno = 138 (0x8a), region = 56  ;;  %278 = vst [vmem:[#allocation12] sm:$0xff] (!%p2595_p8), %v2174_v0  ;;  %279 = vst [vmem:[#allocation13] sm:$0xff] (!%p2595_p8), %v2174_v0 }
  0x84   : > { %280 = vst [vmem:[#allocation15] sm:$0xff] (!%p2595_p8), %v2174_v0 }
  0x8a PF: > { %v401_v1 = vld [vmem:[#allocation7 + $0x8] sm:$0xff]  ;;  %v410_v2 = vld [vmem:[#allocation7 + $0x50] sm:$0xff]  ;;  %v403_v3 = vld [vmem:[#allocation7 + $0x18] sm:$0xff]  ;;  %s2376_s14 = sshll.u32 %s2238_s13, 3  ;;  %vm352_vm0 = vcmask 1040384   ;;  %vm354_vm1 = vcmask 1041408  }
  0x8b   : > { %v1504_v4 = vpack.c.bf16 %v410_v2, %v401_v1  ;;  %v412_v5 = vld [vmem:[#allocation7 + $0x60] sm:$0xff]  ;;  %v409_v7 = vld [vmem:[#allocation7 + $0x48] sm:$0xff]  ;;  %v402_v10 = vld [vmem:[#allocation7 + $0x10] sm:$0xff]  ;;  %s289_s17 = sadd.s32 1, %s2376_s14  ;;  %s2380_s21 = sld [smem:[#allocation3 + %s2376_s14]]  ;;  %vm356_vm2 = vcmask 1042432  }
  0x8c   : > { %v400_v6 = vld [vmem:[#allocation7] sm:$0xff]  ;;  %v1568_v8 = vpack.c.bf16 %v412_v5, %v403_v3  ;;  %v411_v11 = vld [vmem:[#allocation7 + $0x58] sm:$0xff]  ;;  %v421_v15 = vld [vmem:[#allocation7 + $0xa8] sm:$0xff]  ;;  %s2382_s27 = sld [smem:[#allocation3 + %s289_s17]]  ;;  %s295_s12 = sadd.s32 2, %s2376_s14  ;;  %vm358_vm3 = vcmask 1043456  }
  0x8d   : > { %v1506_v9 = vpack.c.bf16 %v409_v7, %v400_v6  ;;  %v419_v12 = vld [vmem:[#allocation7 + $0x98] sm:$0xff]  ;;  %1505 = vmatprep.subr.bf16.mxu0 %v1504_v4  ;;  %v1570_v13 = vpack.c.bf16 %v411_v11, %v402_v10  ;;  %v428_v14 = vld [vmem:[#allocation7 + $0xe0] sm:$0xff]  ;;  %v430_v16 = vld [vmem:[#allocation7 + $0xf0] sm:$0xff]  ;;  %s301_s15 = sadd.s32 3, %s2376_s14  ;;  %s307_s16 = sadd.s32 4, %s2376_s14  ;;  %vm360_vm4 = vcmask 1044480  }
  0x8e   : > { %1569 = vmatprep.subr.bf16.mxu1 %v1568_v8  ;;  %v1508_v17 = vpack.c.bf16 %v428_v14, %v419_v12  ;;  %v1572_v18 = vpack.c.bf16 %v430_v16, %v421_v15  ;;  %v418_v19 = vld [vmem:[#allocation7 + $0x90] sm:$0xff]  ;;  %v427_v20 = vld [vmem:[#allocation7 + $0xd8] sm:$0xff]  ;;  %v420_v21 = vld [vmem:[#allocation7 + $0xa0] sm:$0xff]  ;;  %s313_s18 = sadd.s32 5, %s2376_s14  ;;  %s319_s20 = sadd.s32 6, %s2376_s14  ;;  %vm362_vm5 = vcmask 1045504  }
  0x8f   : > { %1507 = vmatpush1.bf16.msra.mxu0 %v1506_v9  ;;  %1571 = vmatpush1.bf16.msra.mxu1 %v1570_v13  ;;  %v1510_v22 = vpack.c.bf16 %v427_v20, %v418_v19  ;;  %v429_v23 = vld [vmem:[#allocation7 + $0xe8] sm:$0xff]  ;;  %v446_v25 = vld [vmem:[#allocation7 + $0x170] sm:$0xff]  ;;  %v439_v28 = vld [vmem:[#allocation7 + $0x138] sm:$0xff]  ;;  %s325_s22 = sadd.s32 7, %s2376_s14  ;;  %s2390_s23 = sld [smem:[#allocation3 + %s295_s12]]  ;;  %vm364_vm6 = vcmask 1046528  }
  0x90   : > { %v437_v24 = vld [vmem:[#allocation7 + $0x128] sm:$0xff]  ;;  %1509 = vmatprep.subr.bf16.mxu0 %v1508_v17  ;;  %1573 = vmatprep.subr.bf16.mxu1 %v1572_v18  ;;  %v1574_v26 = vpack.c.bf16 %v429_v23, %v420_v21  ;;  %v448_v29 = vld [vmem:[#allocation7 + $0x180] sm:$0xff]  ;;  %v438_v33 = vld [vmem:[#allocation7 + $0x130] sm:$0xff]  ;;  %s2392_s24 = sld [smem:[#allocation3 + %s301_s15]]  ;;  %s1457_s12 = scalar_lea.vmem [#allocation4], %s2163_s11 }
  0x91   : > { %v1512_v27 = vpack.c.bf16 %v446_v25, %v437_v24  ;;  %v436_v30 = vld [vmem:[#allocation7 + $0x120] sm:$0xff]  ;;  %v1576_v31 = vpack.c.bf16 %v448_v29, %v439_v28  ;;  %v445_v32 = vld [vmem:[#allocation7 + $0x168] sm:$0xff]  ;;  %v447_v34 = vld [vmem:[#allocation7 + $0x178] sm:$0xff]  ;;  %s2394_s25 = sld [smem:[#allocation3 + %s307_s16]]  ;;  %s287_s8 = scalar_lea.vmem [#allocation13], %s2380_s21 }
  0x92   : > { %v1514_v35 = vpack.c.bf16 %v445_v32, %v436_v30  ;;  %v455_v36 = vld [vmem:[#allocation7 + $0x1b8] sm:$0xff]  ;;  %v464_v37 = vld [vmem:[#allocation7 + $0x200] sm:$0xff]  ;;  %v457_v38 = vld [vmem:[#allocation7 + $0x1c8] sm:$0xff]  ;;  %v1578_v39 = vpack.c.bf16 %v447_v34, %v438_v33  ;;  %s2396_s0 = sld [smem:[#allocation3 + %s313_s18]]  ;;  %s293_s29 = scalar_lea.vmem [#allocation13], %s2382_s27 }
  0x93   : > { %1511 = vmatpush1.bf16.msra.mxu0 %v1510_v22  ;;  %1575 = vmatpush1.bf16.msra.mxu1 %v1574_v26  ;;  %v1516_v40 = vpack.c.bf16 %v464_v37, %v455_v36  ;;  %v466_v41 = vld [vmem:[#allocation7 + $0x210] sm:$0xff]  ;;  %v463_v43 = vld [vmem:[#allocation7 + $0x1f8] sm:$0xff]  ;;  %v456_v45 = vld [vmem:[#allocation7 + $0x1c0] sm:$0xff]  ;;  %s2398_s26 = sld [smem:[#allocation3 + %s319_s20]]  ;;  %s291_s15 = scalar_lea.vmem [#allocation12], %s2382_s27 }
  0x94   : > { %1513 = vmatprep.subr.bf16.mxu0 %v1512_v27  ;;  %v454_v42 = vld [vmem:[#allocation7 + $0x1b0] sm:$0xff]  ;;  %1577 = vmatprep.subr.bf16.mxu1 %v1576_v31  ;;  %v1580_v44 = vpack.c.bf16 %v466_v41, %v457_v38  ;;  %v465_v46 = vld [vmem:[#allocation7 + $0x208] sm:$0xff]  ;;  %v475_v49 = vld [vmem:[#allocation7 + $0x258] sm:$0xff]  ;;  %s2400_s28 = sld [smem:[#allocation3 + %s325_s22]]  ;;  %s285_s18 = scalar_lea.vmem [#allocation12], %s2380_s21 }
  0x95   : > { %v473_v47 = vld [vmem:[#allocation7 + $0x248] sm:$0xff]  ;;  %v482_v48 = vld [vmem:[#allocation7 + $0x290] sm:$0xff]  ;;  %v484_v50 = vld [vmem:[#allocation7 + $0x2a0] sm:$0xff]  ;;  %v1518_v51 = vpack.c.bf16 %v463_v43, %v454_v42  ;;  %v1582_v52 = vpack.c.bf16 %v465_v46, %v456_v45  ;;  %s299_s30 = scalar_lea.vmem [#allocation13], %s2390_s23  ;;  %s297_s16 = scalar_lea.vmem [#allocation12], %s2390_s23 }
  0x96   : > { %v1520_v53 = vpack.c.bf16 %v482_v48, %v473_v47  ;;  %v472_v54 = vld [vmem:[#allocation7 + $0x240] sm:$0xff]  ;;  %v481_v55 = vld [vmem:[#allocation7 + $0x288] sm:$0xff]  ;;  %v474_v56 = vld [vmem:[#allocation7 + $0x250] sm:$0xff]  ;;  %v1584_v57 = vpack.c.bf16 %v484_v50, %v475_v49  ;;  %s305_s19 = scalar_lea.vmem [#allocation13], %s2392_s24  ;;  %s303_s27 = scalar_lea.vmem [#allocation12], %s2392_s24 }
  0x97   : > { %1515 = vmatpush1.bf16.msra.mxu0 %v1514_v35  ;;  %1579 = vmatpush1.bf16.msra.mxu1 %v1578_v39  ;;  %v483_v58 = vld [vmem:[#allocation7 + $0x298] sm:$0xff]  ;;  %v500_v60 = vld [vmem:[#allocation7 + $0x320] sm:$0xff]  ;;  %v493_v61 = vld [vmem:[#allocation7 + $0x2e8] sm:$0xff]  ;;  %v1522_v63 = vpack.c.bf16 %v481_v55, %v472_v54  ;;  %s311_s9 = scalar_lea.vmem [#allocation13], %s2394_s25  ;;  %s309_s20 = scalar_lea.vmem [#allocation12], %s2394_s25 }
  0x98   : > { %1517 = vmatprep.subr.bf16.mxu0 %v1516_v40  ;;  %1581 = vmatprep.subr.bf16.mxu1 %v1580_v44  ;;  %v491_v59 = vld [vmem:[#allocation7 + $0x2d8] sm:$0xff]  ;;  %v502_v62 = vld [vmem:[#allocation7 + $0x330] sm:$0xff]  ;;  %v1586_v0 = vpack.c.bf16 %v483_v58, %v474_v56  ;;  %v492_v4 = vld [vmem:[#allocation7 + $0x2e0] sm:$0xff]  ;;  %s317_s10 = scalar_lea.vmem [#allocation13], %s2396_s0  ;;  %s315_s21 = scalar_lea.vmem [#allocation12], %s2396_s0 }
  0x99   : > { %v1524_v1 = vpack.c.bf16 %v500_v60, %v491_v59  ;;  %v490_v2 = vld [vmem:[#allocation7 + $0x2d0] sm:$0xff]  ;;  %v499_v3 = vld [vmem:[#allocation7 + $0x318] sm:$0xff]  ;;  %v1588_v5 = vpack.c.bf16 %v502_v62, %v493_v61  ;;  %v501_v6 = vld [vmem:[#allocation7 + $0x328] sm:$0xff]  ;;  %s323_s14 = scalar_lea.vmem [#allocation13], %s2398_s26  ;;  %s321_s22 = scalar_lea.vmem [#allocation12], %s2398_s26 }
  0x9a   : > { %v509_v7 = vld [vmem:[#allocation7 + $0x368] sm:$0xff]  ;;  %v518_v8 = vld [vmem:[#allocation7 + $0x3b0] sm:$0xff]  ;;  %v511_v9 = vld [vmem:[#allocation7 + $0x378] sm:$0xff]  ;;  %v1526_v11 = vpack.c.bf16 %v499_v3, %v490_v2  ;;  %v1590_v12 = vpack.c.bf16 %v501_v6, %v492_v4  ;;  %s329_s17 = scalar_lea.vmem [#allocation13], %s2400_s28  ;;  %s327_s23 = scalar_lea.vmem [#allocation12], %s2400_s28 }
  0x9b   : > { %1519 = vmatpush1.bf16.msra.mxu0 %v1518_v51  ;;  %1583 = vmatpush1.bf16.msra.mxu1 %v1582_v52  ;;  %v520_v10 = vld [vmem:[#allocation7 + $0x3c0] sm:$0xff]  ;;  %v1528_v13 = vpack.c.bf16 %v518_v8, %v509_v7  ;;  %v517_v15 = vld [vmem:[#allocation7 + $0x3a8] sm:$0xff]  ;;  %v510_v16 = vld [vmem:[#allocation7 + $0x370] sm:$0xff]  ;;  %s1466_s24 = scalar_lea.vmem [#allocation15], %s2163_s11  ;;  %s2177_s25 = smov [#allocation13]  }
  0x9c   : > { %1521 = vmatprep.subr.bf16.mxu0 %v1520_v53  ;;  %1585 = vmatprep.subr.bf16.mxu1 %v1584_v57  ;;  %v508_v14 = vld [vmem:[#allocation7 + $0x360] sm:$0xff]  ;;  %v1592_v17 = vpack.c.bf16 %v520_v10, %v511_v9  ;;  %v519_v18 = vld [vmem:[#allocation7 + $0x3b8] sm:$0xff]  ;;  %v529_v21 = vld [vmem:[#allocation7 + $0x408] sm:$0xff]  ;;  %s1305_s0 = sshll.u32 %s2177_s25, 4  ;;  %p1873_p10 = scmp.eq.s32.totalorder %s2238_s13, 6  ;;  %s1306_s0 = int_to_ptr.vmem [resolvable:$true] %s1305_s0 }
  0x9d   : > { %v527_v19 = vld [vmem:[#allocation7 + $0x3f8] sm:$0xff]  ;;  %v536_v20 = vld [vmem:[#allocation7 + $0x440] sm:$0xff]  ;;  %v538_v22 = vld [vmem:[#allocation7 + $0x450] sm:$0xff]  ;;  %v1530_v23 = vpack.c.bf16 %v517_v15, %v508_v14  ;;  %v1594_v24 = vpack.c.bf16 %v519_v18, %v510_v16  ;;  %s2178_s26 = smov [#allocation12]   ;;  %p2064_p0 = scmp.lt.s32.totalorder %s1306_s0, %s1306_s0 }
  0x9e   : > { %v1532_v25 = vpack.c.bf16 %v536_v20, %v527_v19  ;;  %v526_v26 = vld [vmem:[#allocation7 + $0x3f0] sm:$0xff]  ;;  %v535_v27 = vld [vmem:[#allocation7 + $0x438] sm:$0xff]  ;;  %v528_v28 = vld [vmem:[#allocation7 + $0x400] sm:$0xff]  ;;  %v1596_v29 = vpack.c.bf16 %v538_v22, %v529_v21  ;;  %s1294_s28 = sshll.u32 %s2178_s26, 4  ;;  %s2494_s28 = int_to_ptr.vmem [resolvable:$true] %s1294_s28 }
  0x9f   : > { %1523 = vmatpush1.bf16.msra.mxu0 %v1522_v63  ;;  %1587 = vmatpush1.bf16.msra.mxu1 %v1586_v0  ;;  %v537_v30 = vld [vmem:[#allocation7 + $0x448] sm:$0xff]  ;;  %v554_v32 = vld [vmem:[#allocation7 + $0x4d0] sm:$0xff]  ;;  %v547_v33 = vld [vmem:[#allocation7 + $0x498] sm:$0xff]  ;;  %v1534_v35 = vpack.c.bf16 %v535_v27, %v526_v26 }
  0xa0   : > { %1525 = vmatprep.subr.bf16.mxu0 %v1524_v1  ;;  %1589 = vmatprep.subr.bf16.mxu1 %v1588_v5  ;;  %v545_v31 = vld [vmem:[#allocation7 + $0x488] sm:$0xff]  ;;  %v556_v34 = vld [vmem:[#allocation7 + $0x4e0] sm:$0xff]  ;;  %v1598_v36 = vpack.c.bf16 %v537_v30, %v528_v28  ;;  %v546_v40 = vld [vmem:[#allocation7 + $0x490] sm:$0xff] }
  0xa1   : > { %v1536_v37 = vpack.c.bf16 %v554_v32, %v545_v31  ;;  %v544_v38 = vld [vmem:[#allocation7 + $0x480] sm:$0xff]  ;;  %v553_v39 = vld [vmem:[#allocation7 + $0x4c8] sm:$0xff]  ;;  %v1600_v41 = vpack.c.bf16 %v556_v34, %v547_v33  ;;  %v555_v42 = vld [vmem:[#allocation7 + $0x4d8] sm:$0xff] }
  0xa2   : > { %v563_v43 = vld [vmem:[#allocation7 + $0x518] sm:$0xff]  ;;  %v572_v44 = vld [vmem:[#allocation7 + $0x560] sm:$0xff]  ;;  %v565_v45 = vld [vmem:[#allocation7 + $0x528] sm:$0xff]  ;;  %v1538_v47 = vpack.c.bf16 %v553_v39, %v544_v38  ;;  %v1602_v48 = vpack.c.bf16 %v555_v42, %v546_v40 }
  0xa3   : > { %1527 = vmatpush1.bf16.msra.mxu0 %v1526_v11  ;;  %1591 = vmatpush1.bf16.msra.mxu1 %v1590_v12  ;;  %v574_v46 = vld [vmem:[#allocation7 + $0x570] sm:$0xff]  ;;  %v1540_v49 = vpack.c.bf16 %v572_v44, %v563_v43  ;;  %v571_v51 = vld [vmem:[#allocation7 + $0x558] sm:$0xff]  ;;  %v564_v52 = vld [vmem:[#allocation7 + $0x520] sm:$0xff] }
  0xa4   : > { %1529 = vmatprep.subr.bf16.mxu0 %v1528_v13  ;;  %1593 = vmatprep.subr.bf16.mxu1 %v1592_v17  ;;  %v562_v50 = vld [vmem:[#allocation7 + $0x510] sm:$0xff]  ;;  %v1604_v53 = vpack.c.bf16 %v574_v46, %v565_v45  ;;  %v573_v54 = vld [vmem:[#allocation7 + $0x568] sm:$0xff]  ;;  %v583_v57 = vld [vmem:[#allocation7 + $0x5b8] sm:$0xff] }
  0xa5   : > { %v581_v55 = vld [vmem:[#allocation7 + $0x5a8] sm:$0xff]  ;;  %v590_v56 = vld [vmem:[#allocation7 + $0x5f0] sm:$0xff]  ;;  %v592_v58 = vld [vmem:[#allocation7 + $0x600] sm:$0xff]  ;;  %v1542_v59 = vpack.c.bf16 %v571_v51, %v562_v50  ;;  %v1606_v60 = vpack.c.bf16 %v573_v54, %v564_v52 }
  0xa6   : > { %v1544_v61 = vpack.c.bf16 %v590_v56, %v581_v55  ;;  %v580_v62 = vld [vmem:[#allocation7 + $0x5a0] sm:$0xff]  ;;  %v589_v63 = vld [vmem:[#allocation7 + $0x5e8] sm:$0xff]  ;;  %v582_v0 = vld [vmem:[#allocation7 + $0x5b0] sm:$0xff]  ;;  %v1608_v1 = vpack.c.bf16 %v592_v58, %v583_v57 }
  0xa7   : > { %1531 = vmatpush1.bf16.msra.mxu0 %v1530_v23  ;;  %1595 = vmatpush1.bf16.msra.mxu1 %v1594_v24  ;;  %v591_v2 = vld [vmem:[#allocation7 + $0x5f8] sm:$0xff]  ;;  %v608_v4 = vld [vmem:[#allocation7 + $0x680] sm:$0xff]  ;;  %v601_v5 = vld [vmem:[#allocation7 + $0x648] sm:$0xff]  ;;  %v1546_v7 = vpack.c.bf16 %v589_v63, %v580_v62 }
  0xa8   : > { %1533 = vmatprep.subr.bf16.mxu0 %v1532_v25  ;;  %1597 = vmatprep.subr.bf16.mxu1 %v1596_v29  ;;  %v599_v3 = vld [vmem:[#allocation7 + $0x638] sm:$0xff]  ;;  %v610_v6 = vld [vmem:[#allocation7 + $0x690] sm:$0xff]  ;;  %v1610_v10 = vpack.c.bf16 %v591_v2, %v582_v0  ;;  %v600_v12 = vld [vmem:[#allocation7 + $0x640] sm:$0xff] }
  0xa9   : > { %v598_v8 = vld [vmem:[#allocation7 + $0x630] sm:$0xff]  ;;  %v607_v9 = vld [vmem:[#allocation7 + $0x678] sm:$0xff]  ;;  %v1548_v11 = vpack.c.bf16 %v608_v4, %v599_v3  ;;  %v609_v13 = vld [vmem:[#allocation7 + $0x688] sm:$0xff]  ;;  %v1612_v15 = vpack.c.bf16 %v610_v6, %v601_v5 }
  0xaa   : > { %v617_v14 = vld [vmem:[#allocation7 + $0x6c8] sm:$0xff]  ;;  %v626_v16 = vld [vmem:[#allocation7 + $0x710] sm:$0xff]  ;;  %v619_v17 = vld [vmem:[#allocation7 + $0x6d8] sm:$0xff]  ;;  %v1550_v24 = vpack.c.bf16 %v607_v9, %v598_v8  ;;  %v1614_v25 = vpack.c.bf16 %v609_v13, %v600_v12 }
  0xab   : > { %1535 = vmatpush1.bf16.msra.mxu0 %v1534_v35  ;;  %1599 = vmatpush1.bf16.msra.mxu1 %v1598_v36  ;;  %v628_v18 = vld [vmem:[#allocation7 + $0x720] sm:$0xff]  ;;  %v2404_v20 = vld [vmem:[#allocation7 + $0x708] sm:$0xff]  ;;  %v294_v21 = vld [vmem:[%s293_s29] sm:$0x1]  ;;  %v1552_v30 = vpack.c.bf16 %v626_v16, %v617_v14  ;;  %s2179_s29 = smov [#allocation15]  }
  0xac   : > { %1537 = vmatprep.subr.bf16.mxu0 %v1536_v37  ;;  %1601 = vmatprep.subr.bf16.mxu1 %v1600_v41  ;;  %v2402_v19 = vld [vmem:[#allocation7 + $0x6c0] sm:$0xff]  ;;  %v300_v22 = vld [vmem:[%s299_s30] sm:$0x1]  ;;  %v618_v26 = vld [vmem:[#allocation7 + $0x6d0] sm:$0xff]  ;;  %v367_v33 = vrot.slane %v294_v21, 7  ;;  %v1616_v36 = vpack.c.bf16 %v628_v18, %v619_v17  ;;  %s1316_s30 = sshll.u32 %s2179_s29, 4  ;;  %s2498_s30 = int_to_ptr.vmem [resolvable:$true] %s1316_s30 }
  0xad   : > { %v306_v23 = vld [vmem:[%s305_s19] sm:$0x1]  ;;  %v370_v34 = vrot.slane %v300_v22, 6  ;;  %v644_v38 = vld [vmem:[#allocation7 + $0x7a0] sm:$0xff]  ;;  %v637_v41 = vld [vmem:[#allocation7 + $0x768] sm:$0xff]  ;;  %v1554_v45 = vpack.c.bf16 %v2404_v20, %v2402_v19  ;;  %s1463_s19 = scalar_lea.vmem [#allocation13], %s2163_s11 }
  0xae   : > { %v288_v27 = vld [vmem:[%s287_s8] sm:$0x1]  ;;  %v373_v35 = vrot.slane %v306_v23, 5  ;;  %v646_v42 = vld [vmem:[#allocation7 + $0x7b0] sm:$0xff]  ;;  %v636_v52 = vld [vmem:[#allocation7 + $0x760] sm:$0xff]  ;;  %s1460_s8 = scalar_lea.vmem [#allocation12], %s2163_s11 }
  0xaf   : > { %1539 = vmatpush1.bf16.msra.mxu0 %v1538_v47  ;;  %1603 = vmatpush1.bf16.msra.mxu1 %v1602_v48  ;;  %v312_v28 = vld [vmem:[%s311_s9] sm:$0x1]  ;;  %v387_v44 = vsel %vm352_vm0, %v288_v27, %v367_v33  ;;  %v634_v50 = vld [vmem:[#allocation7 + $0x750] sm:$0xff]  ;;  %v1620_v55 = vpack.c.bf16 %v646_v42, %v637_v41  ;;  %v645_v56 = vld [vmem:[#allocation7 + $0x7a8] sm:$0xff]  ;;  %s2057_s9 = scalar_lea.vmem %s1306_s0, 128 }
  0xb0   : > { %1541 = vmatprep.subr.bf16.mxu0 %v1540_v49  ;;  %1605 = vmatprep.subr.bf16.mxu1 %v1604_v53  ;;  %v318_v29 = vld [vmem:[%s317_s10] sm:$0x1]  ;;  %v376_v40 = vrot.slane %v312_v28, 4  ;;  %v388_v47 = vsel %vm354_vm1, %v387_v44, %v370_v34  ;;  %v653_v57 = vld [vmem:[#allocation7 + $0x7e8] sm:$0xff]  ;;  %v662_v58 = vld [vmem:[#allocation7 + $0x830] sm:$0xff]  ;;  %p2058_p12 = scmp.ne.s32.totalorder %s1306_s0, %s2057_s9  ;;  %p2065_p1 = scmp.lt.s32.totalorder %s2057_s9, %s2057_s9 }
  0xb1   : > { %v627_v31 = vld [vmem:[#allocation7 + $0x718] sm:$0xff]  ;;  %v379_v43 = vrot.slane %v318_v29, 3  ;;  %v389_v54 = vsel %vm356_vm2, %v388_v47, %v373_v35  ;;  %v1560_v2 = vpack.c.bf16 %v662_v58, %v653_v57  ;;  %v652_v3 = vld [vmem:[#allocation7 + $0x7e0] sm:$0xff]  ;;  %v661_v4 = vld [vmem:[#allocation7 + $0x828] sm:$0xff] }
  0xb2   : > { %v324_v32 = vld [vmem:[%s323_s14] sm:$0x1]  ;;  %v1618_v48 = vpack.c.bf16 %v627_v31, %v618_v26  ;;  %v654_v5 = vld [vmem:[#allocation7 + $0x7f0] sm:$0xff]  ;;  %v673_v12 = vld [vmem:[#allocation7 + $0x888] sm:$0xff]  ;;  %v1562_v14 = vpack.c.bf16 %v661_v4, %v652_v3  ;;  %p2059_p5 = pnand %p2058_p12, %p1873_p10  ;;  %p2066_p2 = por %p2065_p1, %p2064_p0 }
  0xb3   : > { %1543 = vmatpush1.bf16.msra.mxu0 %v1542_v59  ;;  %1607 = vmatpush1.bf16.msra.mxu1 %v1606_v60  ;;  %v635_v37 = vld [vmem:[#allocation7 + $0x758] sm:$0xff]  ;;  %v382_v46 = vrot.slane %v324_v32, 2  ;;  %v390_v59 = vsel %vm358_vm3, %v389_v54, %v376_v40  ;;  %v682_v13 = vld [vmem:[#allocation7 + $0x8d0] sm:$0xff]  ;;  %v672_v20 = vld [vmem:[#allocation7 + $0x880] sm:$0xff] }
  0xb4   : > { %1545 = vmatprep.subr.bf16.mxu0 %v1544_v61  ;;  %1609 = vmatprep.subr.bf16.mxu1 %v1608_v1  ;;  %v330_v39 = vld [vmem:[%s329_s17] sm:$0x1]  ;;  %v1556_v49 = vpack.c.bf16 %v644_v38, %v635_v37  ;;  %v664_v61 = vld [vmem:[#allocation7 + $0x840] sm:$0xff]  ;;  %v391_v62 = vsel %vm360_vm4, %v390_v59, %v379_v43  ;;  %v1622_v1 = vpack.c.bf16 %v645_v56, %v636_v52  ;;  %v670_v18 = vld [vmem:[#allocation7 + $0x870] sm:$0xff]  ;;  %p2060_p13 = pneg %p2059_p5 }
  0xb5   : > { %v643_v51 = vld [vmem:[#allocation7 + $0x798] sm:$0xff]  ;;  %v385_v53 = vrot.slane %v330_v39, 1  ;;  %v392_v0 = vsel %vm362_vm5, %v391_v62, %v382_v46  ;;  %v1628_v21 = vpack.c.bf16 %v682_v13, %v673_v12  ;;  %v681_v22 = vld [vmem:[#allocation7 + $0x8c8] sm:$0xff]  ;;  %v416_v29 = vld [vmem:[#allocation7 + $0x80] sm:$0xff] }
  0xb6   : > { %v655_v60 = vld [vmem:[#allocation7 + $0x7f8] sm:$0xff]  ;;  %v1558_v63 = vpack.c.bf16 %v643_v51, %v634_v50  ;;  %v404_v32 = vld [vmem:[#allocation7 + $0x20] sm:$0xff]  ;;  %v413_v33 = vld [vmem:[#allocation7 + $0x68] sm:$0xff]  ;;  %p2067_p3 = pnand %p2066_p2, %p2060_p13 }
  0xb7   : > { %1547 = vmatpush1.bf16.msra.mxu0 %v1546_v7  ;;  %1611 = vmatpush1.bf16.msra.mxu1 %v1610_v10  ;;  %v2423_v6 = vsel %vm364_vm6, %v392_v0, %v385_v53  ;;  %v1624_v7 = vpack.c.bf16 %v664_v61, %v655_v60  ;;  %v663_v8 = vld [vmem:[#allocation7 + $0x838] sm:$0xff]  ;;  %v680_v10 = vld [vmem:[#allocation7 + $0x8c0] sm:$0xff]  ;;  %v406_v34 = vld [vmem:[#allocation7 + $0x30] sm:$0xff]  ;;  %v1634_v44 = vpack.c.bf16 %v413_v33, %v404_v32 }
  0xb8   : > { %1549 = vmatprep.subr.bf16.mxu0 %v1548_v11  ;;  %1613 = vmatprep.subr.bf16.mxu1 %v1612_v15  ;;  %v671_v9 = vld [vmem:[#allocation7 + $0x878] sm:$0xff]  ;;  %v394_v11 = vrot.slane %v2423_v6, 4  ;;  %v1626_v16 = vpack.c.bf16 %v663_v8, %v654_v5  ;;  %v432_v38 = vld [vmem:[#allocation7 + $0x100] sm:$0xff]  ;;  %v425_v40 = vld [vmem:[#allocation7 + $0xc8] sm:$0xff] }
  0xb9   : > { %v1564_v17 = vpack.c.bf16 %v680_v10, %v671_v9  ;;  %v679_v19 = vld [vmem:[#allocation7 + $0x8b8] sm:$0xff]  ;;  %v434_v41 = vld [vmem:[#allocation7 + $0x110] sm:$0xff]  ;;  %v433_v51 = vld [vmem:[#allocation7 + $0x108] sm:$0xff] }
  0xba   : > { %v395_v15 = vadd.f32 %v394_v11, %v2423_v6  ;;  %v1566_v26 = vpack.c.bf16 %v679_v19, %v670_v18  ;;  %v407_v28 = vld [vmem:[#allocation7 + $0x38] sm:$0xff]  ;;  %v2430_v43 = vld [vmem:[%s1457_s12 - $0x1] sm:$0x1]  ;;  %v1700_v50 = vpack.c.bf16 %v434_v41, %v425_v40  ;;  %v441_v52 = vld [vmem:[#allocation7 + $0x148] sm:$0xff] }
  0xbb   : > { %1551 = vmatpush1.bf16.msra.mxu0 %v1550_v24  ;;  %1615 = vmatpush1.bf16.msra.mxu1 %v1614_v25  ;;  %v405_v24 = vld [vmem:[#allocation7 + $0x28] sm:$0xff]  ;;  %v414_v25 = vld [vmem:[#allocation7 + $0x70] sm:$0xff]  ;;  %v423_v37 = vld [vmem:[#allocation7 + $0xb8] sm:$0xff]  ;;  %v1696_v39 = vpack.c.bf16 %v416_v29, %v407_v28 }
  0xbc   : > { %1553 = vmatprep.subr.bf16.mxu0 %v1552_v30  ;;  %1617 = vmatprep.subr.bf16.mxu1 %v1616_v36  ;;  %v396_v23 = vrot.slane %v395_v15, 2  ;;  %v1630_v30 = vpack.c.bf16 %v681_v22, %v672_v20  ;;  %v1632_v31 = vpack.c.bf16 %v414_v25, %v405_v24  ;;  %v415_v36 = vld [vmem:[#allocation7 + $0x78] sm:$0xff]  ;;  %v1636_v46 = vpack.c.bf16 %v432_v38, %v423_v37  ;;  %v422_v47 = vld [vmem:[#allocation7 + $0xb0] sm:$0xff]  ;;  %v440_v59 = vld [vmem:[#allocation7 + $0x140] sm:$0xff] }
  0xbd   : > { %v450_v53 = vld [vmem:[#allocation7 + $0x190] sm:$0xff]  ;;  %v443_v54 = vld [vmem:[#allocation7 + $0x158] sm:$0xff]  ;;  %v449_v60 = vld [vmem:[#allocation7 + $0x188] sm:$0xff] }
  0xbe   : > { %v397_v27 = vadd.f32 %v396_v23, %v395_v15  ;;  %v1640_v58 = vpack.c.bf16 %v450_v53, %v441_v52  ;;  %v442_v61 = vld [vmem:[#allocation7 + $0x150] sm:$0xff]  ;;  %v459_v0 = vld [vmem:[#allocation7 + $0x1d8] sm:$0xff]  ;;  %v1642_v4 = vpack.c.bf16 %v449_v60, %v440_v59  ;;  %v460_v10 = vld [vmem:[#allocation7 + $0x1e0] sm:$0xff] }
  0xbf   : > { %1555 = vmatpush1.bf16.msra.mxu0 %v1554_v45  ;;  %1619 = vmatpush1.bf16.msra.mxu1 %v1618_v48  ;;  %v1698_v45 = vpack.c.bf16 %v415_v36, %v406_v34  ;;  %v431_v48 = vld [vmem:[#allocation7 + $0xf8] sm:$0xff]  ;;  %v470_v3 = vld [vmem:[#allocation7 + $0x230] sm:$0xff]  ;;  %v469_v12 = vld [vmem:[#allocation7 + $0x228] sm:$0xff] }
  0xc0   : > { %1557 = vmatprep.subr.bf16.mxu0 %v1556_v49  ;;  %1621 = vmatprep.subr.bf16.mxu1 %v1620_v55  ;;  %v398_v35 = vrot.slane %v397_v27, 1  ;;  %v424_v49 = vld [vmem:[#allocation7 + $0xc0] sm:$0xff]  ;;  %v1638_v56 = vpack.c.bf16 %v431_v48, %v422_v47  ;;  %v458_v8 = vld [vmem:[#allocation7 + $0x1d0] sm:$0xff]  ;;  %v467_v9 = vld [vmem:[#allocation7 + $0x218] sm:$0xff]  ;;  %v1710_v18 = vpack.c.bf16 %v469_v12, %v460_v10 }
  0xc1   : > { %v452_v55 = vld [vmem:[#allocation7 + $0x1a0] sm:$0xff]  ;;  %v1702_v57 = vpack.c.bf16 %v433_v51, %v424_v49  ;;  %v477_v13 = vld [vmem:[#allocation7 + $0x268] sm:$0xff]  ;;  %v479_v15 = vld [vmem:[#allocation7 + $0x278] sm:$0xff] }
  0xc2   : > { %v2427_v42 = vadd.f32 %v398_v35, %v397_v27  ;;  %v1704_v62 = vpack.c.bf16 %v452_v55, %v443_v54  ;;  %v476_v20 = vld [vmem:[#allocation7 + $0x260] sm:$0xff]  ;;  %v478_v22 = vld [vmem:[#allocation7 + $0x270] sm:$0xff]  ;;  %v487_v24 = vld [vmem:[#allocation7 + $0x2b8] sm:$0xff] }
  0xc3   : > { %1559 = vmatpush1.bf16.msra.mxu0 %v1558_v63  ;;  %1623 = vmatpush1.bf16.msra.mxu1 %v1622_v1  ;;  %v451_v63 = vld [vmem:[#allocation7 + $0x198] sm:$0xff]  ;;  %v468_v1 = vld [vmem:[#allocation7 + $0x220] sm:$0xff]  ;;  %v497_v27 = vld [vmem:[#allocation7 + $0x308] sm:$0xff] }
  0xc4   : > { %1561 = vmatprep.subr.bf16.mxu0 %v1560_v2  ;;  %1625 = vmatprep.subr.bf16.mxu1 %v1624_v7  ;;  %v461_v2 = vld [vmem:[#allocation7 + $0x1e8] sm:$0xff]  ;;  %v1706_v5 = vpack.c.bf16 %v451_v63, %v442_v61  ;;  %v1644_v7 = vpack.c.bf16 %v468_v1, %v459_v0  ;;  %v495_v25 = vld [vmem:[#allocation7 + $0x2f8] sm:$0xff]  ;;  %v506_v28 = vld [vmem:[#allocation7 + $0x350] sm:$0xff] }
  0xc5   : > { %801 = vmatprep.mubr.f32.mxu0 %v2427_v42  ;;  %872 = vmatprep.mubr.f32.mxu1 %v2427_v42  ;;  %v1708_v11 = vpack.c.bf16 %v470_v3, %v461_v2  ;;  %v494_v32 = vld [vmem:[#allocation7 + $0x2f0] sm:$0xff]  ;;  %v503_v33 = vld [vmem:[#allocation7 + $0x338] sm:$0xff]  ;;  %v496_v34 = vld [vmem:[#allocation7 + $0x300] sm:$0xff]  ;;  %v1716_v35 = vpack.c.bf16 %v506_v28, %v497_v27 }
  0xc6   : > { %v505_v36 = vld [vmem:[#allocation7 + $0x348] sm:$0xff]  ;;  %v522_v38 = vld [vmem:[#allocation7 + $0x3d0] sm:$0xff]  ;;  %v524_v40 = vld [vmem:[#allocation7 + $0x3e0] sm:$0xff]  ;;  %v1654_v41 = vpack.c.bf16 %v503_v33, %v494_v32 }
  0xc7   : > { %1563 = vmatpush1.bf16.msra.mxu0 %v1562_v14  ;;  %1627 = vmatpush1.bf16.msra.mxu1 %v1626_v16  ;;  %v486_v14 = vld [vmem:[#allocation7 + $0x2b0] sm:$0xff]  ;;  %v488_v16 = vld [vmem:[#allocation7 + $0x2c0] sm:$0xff]  ;;  %v513_v37 = vld [vmem:[#allocation7 + $0x388] sm:$0xff] }
  0xc8   : > { %1565 = vmatprep.subr.bf16.mxu0 %v1564_v17  ;;  %1629 = vmatprep.subr.bf16.mxu1 %v1628_v21  ;;  %v1646_v17 = vpack.c.bf16 %v467_v9, %v458_v8  ;;  %v1648_v19 = vpack.c.bf16 %v486_v14, %v477_v13  ;;  %v485_v21 = vld [vmem:[#allocation7 + $0x2a8] sm:$0xff]  ;;  %v1712_v23 = vpack.c.bf16 %v488_v16, %v479_v15  ;;  %v514_v48 = vld [vmem:[#allocation7 + $0x390] sm:$0xff]  ;;  %v531_v51 = vld [vmem:[#allocation7 + $0x418] sm:$0xff] }
  0xc9   : > { %v1650_v29 = vpack.c.bf16 %v485_v21, %v476_v20  ;;  %v521_v47 = vld [vmem:[#allocation7 + $0x3c8] sm:$0xff]  ;;  %v540_v52 = vld [vmem:[#allocation7 + $0x460] sm:$0xff]  ;;  %v542_v54 = vld [vmem:[#allocation7 + $0x470] sm:$0xff] }
  0xca   : > { %v533_v53 = vld [vmem:[#allocation7 + $0x428] sm:$0xff]  ;;  %v539_v59 = vld [vmem:[#allocation7 + $0x458] sm:$0xff]  ;;  %v532_v60 = vld [vmem:[#allocation7 + $0x420] sm:$0xff] }
  0xcb   : > { %1567 = vmatpush1.bf16.msra.mxu0 %v1566_v26  ;;  %1631 = vmatpush1.bf16.msra.mxu1 %v1630_v30  ;;  %v504_v26 = vld [vmem:[#allocation7 + $0x340] sm:$0xff]  ;;  %v1714_v30 = vpack.c.bf16 %v487_v24, %v478_v22  ;;  %v1724_v61 = vpack.c.bf16 %v542_v54, %v533_v53  ;;  %v549_v63 = vld [vmem:[#allocation7 + $0x4a8] sm:$0xff]  ;;  %v558_v0 = vld [vmem:[#allocation7 + $0x4f0] sm:$0xff] }
  0xcc   : > { %1633 = vmatprep.subr.bf16.mxu0 %v1632_v31  ;;  %1697 = vmatprep.subr.bf16.mxu1 %v1696_v39  ;;  %v1652_v31 = vpack.c.bf16 %v504_v26, %v495_v25  ;;  %v515_v39 = vld [vmem:[#allocation7 + $0x398] sm:$0xff]  ;;  %v560_v2 = vld [vmem:[#allocation7 + $0x500] sm:$0xff]  ;;  %v557_v8 = vld [vmem:[#allocation7 + $0x4e8] sm:$0xff] }
  0xcd   : > { %v1720_v49 = vpack.c.bf16 %v524_v40, %v515_v39  ;;  %v551_v1 = vld [vmem:[#allocation7 + $0x4b8] sm:$0xff]  ;;  %v550_v9 = vld [vmem:[#allocation7 + $0x4b0] sm:$0xff]  ;;  %v576_v13 = vld [vmem:[#allocation7 + $0x580] sm:$0xff] }
  0xce   : > { %802 = vmatmul.mubr.f32.vlgmr.msra.gmra.mrb[0].mxu0 %v2430_v43  ;;  %873 = vmatmul.mubr.f32.vlgmr.msra.gmra.mrb[0].mxu1 %v2430_v43  ;;  %v1728_v10 = vpack.c.bf16 %v560_v2, %v551_v1  ;;  %v567_v12 = vld [vmem:[#allocation7 + $0x538] sm:$0xff]  ;;  %v569_v14 = vld [vmem:[#allocation7 + $0x548] sm:$0xff]  ;;  %v578_v15 = vld [vmem:[#allocation7 + $0x590] sm:$0xff] }
  0xcf   : > { %1635 = vmatpush1.bf16.msra.mxu0 %v1634_v44  ;;  %1699 = vmatpush1.bf16.msra.mxu1 %v1698_v45  ;;  %v1718_v44 = vpack.c.bf16 %v505_v36, %v496_v34  ;;  %v1656_v45 = vpack.c.bf16 %v522_v38, %v513_v37  ;;  %v575_v20 = vld [vmem:[#allocation7 + $0x578] sm:$0xff]  ;;  %v568_v21 = vld [vmem:[#allocation7 + $0x540] sm:$0xff]  ;;  %v1732_v22 = vpack.c.bf16 %v578_v15, %v569_v14  ;;  %v585_v24 = vld [vmem:[#allocation7 + $0x5c8] sm:$0xff] }
  0xd0   : > { %1637 = vmatprep.subr.bf16.mxu0 %v1636_v46  ;;  %1701 = vmatprep.subr.bf16.mxu1 %v1700_v50  ;;  %v512_v46 = vld [vmem:[#allocation7 + $0x380] sm:$0xff]  ;;  %v523_v50 = vld [vmem:[#allocation7 + $0x3d8] sm:$0xff]  ;;  %v594_v25 = vld [vmem:[#allocation7 + $0x610] sm:$0xff] }
  0xd1   : > { %943 = vmatprep.mubr.f32.mxu0 %v2427_v42  ;;  %1014 = vmatprep.mubr.f32.mxu1 %v2427_v42  ;;  %v1658_v55 = vpack.c.bf16 %v521_v47, %v512_v46  ;;  %v587_v26 = vld [vmem:[#allocation7 + $0x5d8] sm:$0xff]  ;;  %v596_v27 = vld [vmem:[#allocation7 + $0x620] sm:$0xff]  ;;  %v593_v32 = vld [vmem:[#allocation7 + $0x608] sm:$0xff] }
  0xd2   : > { %v586_v33 = vld [vmem:[#allocation7 + $0x5d0] sm:$0xff]  ;;  %v1736_v34 = vpack.c.bf16 %v596_v27, %v587_v26  ;;  %v603_v36 = vld [vmem:[#allocation7 + $0x658] sm:$0xff]  ;;  %v612_v37 = vld [vmem:[#allocation7 + $0x6a0] sm:$0xff] }
  0xd3   : > { %1639 = vmatpush1.bf16.msra.mxu0 %v1638_v56  ;;  %1703 = vmatpush1.bf16.msra.mxu1 %v1702_v57  ;;  %v1722_v56 = vpack.c.bf16 %v523_v50, %v514_v48  ;;  %v1660_v57 = vpack.c.bf16 %v540_v52, %v531_v51  ;;  %v605_v38 = vld [vmem:[#allocation7 + $0x668] sm:$0xff]  ;;  %v614_v39 = vld [vmem:[#allocation7 + $0x6b0] sm:$0xff]  ;;  %v611_v46 = vld [vmem:[#allocation7 + $0x698] sm:$0xff] }
  0xd4   : > { %1641 = vmatprep.subr.bf16.mxu0 %v1640_v58  ;;  %1705 = vmatprep.subr.bf16.mxu1 %v1704_v62  ;;  %v530_v58 = vld [vmem:[#allocation7 + $0x410] sm:$0xff]  ;;  %v541_v62 = vld [vmem:[#allocation7 + $0x468] sm:$0xff]  ;;  %v604_v47 = vld [vmem:[#allocation7 + $0x660] sm:$0xff]  ;;  %v1740_v48 = vpack.c.bf16 %v614_v39, %v605_v38 }
  0xd5   : > { %v1662_v3 = vpack.c.bf16 %v539_v59, %v530_v58  ;;  %v621_v50 = vld [vmem:[#allocation7 + $0x6e8] sm:$0xff]  ;;  %v630_v51 = vld [vmem:[#allocation7 + $0x730] sm:$0xff]  ;;  %v623_v52 = vld [vmem:[#allocation7 + $0x6f8] sm:$0xff] }
  0xd6   : > { %v632_v53 = vld [vmem:[#allocation7 + $0x740] sm:$0xff]  ;;  %v629_v58 = vld [vmem:[#allocation7 + $0x728] sm:$0xff]  ;;  %v622_v59 = vld [vmem:[#allocation7 + $0x6f0] sm:$0xff] }
  0xd7   : > { %1643 = vmatpush1.bf16.msra.mxu0 %v1642_v4  ;;  %1707 = vmatpush1.bf16.msra.mxu1 %v1706_v5  ;;  %v1726_v4 = vpack.c.bf16 %v541_v62, %v532_v60  ;;  %v1664_v5 = vpack.c.bf16 %v558_v0, %v549_v63  ;;  %v1744_v60 = vpack.c.bf16 %v632_v53, %v623_v52  ;;  %v639_v62 = vld [vmem:[#allocation7 + $0x778] sm:$0xff]  ;;  %v648_v63 = vld [vmem:[#allocation7 + $0x7c0] sm:$0xff]  ;;  %v641_v0 = vld [vmem:[#allocation7 + $0x788] sm:$0xff] }
  0xd8   : > { %1645 = vmatprep.subr.bf16.mxu0 %v1644_v7  ;;  %1709 = vmatprep.subr.bf16.mxu1 %v1708_v11  ;;  %v548_v7 = vld [vmem:[#allocation7 + $0x4a0] sm:$0xff]  ;;  %v559_v11 = vld [vmem:[#allocation7 + $0x4f8] sm:$0xff]  ;;  %v650_v1 = vld [vmem:[#allocation7 + $0x7d0] sm:$0xff] }
  0xd9   : > { %v1666_v16 = vpack.c.bf16 %v557_v8, %v548_v7  ;;  %v647_v7 = vld [vmem:[#allocation7 + $0x7b8] sm:$0xff]  ;;  %v640_v8 = vld [vmem:[#allocation7 + $0x780] sm:$0xff]  ;;  %v686_v26 = vld [vmem:[#allocation7 + $0x8f0] sm:$0xff] }
  0xda   : > { %v668_v14 = vld [vmem:[#allocation7 + $0x860] sm:$0xff] }
  0xdb   : > { %1647 = vmatpush1.bf16.msra.mxu0 %v1646_v17  ;;  %1711 = vmatpush1.bf16.msra.mxu1 %v1710_v18  ;;  %v1730_v17 = vpack.c.bf16 %v559_v11, %v550_v9  ;;  %v1668_v18 = vpack.c.bf16 %v576_v13, %v567_v12  ;;  %v1748_v9 = vpack.c.bf16 %v650_v1, %v641_v0  ;;  %v657_v11 = vld [vmem:[#allocation7 + $0x808] sm:$0xff]  ;;  %v666_v12 = vld [vmem:[#allocation7 + $0x850] sm:$0xff]  ;;  %v659_v13 = vld [vmem:[#allocation7 + $0x818] sm:$0xff] }
  0xdc   : > { %1649 = vmatprep.subr.bf16.mxu0 %v1648_v19  ;;  %1713 = vmatprep.subr.bf16.mxu1 %v1712_v23  ;;  %v566_v19 = vld [vmem:[#allocation7 + $0x530] sm:$0xff]  ;;  %v577_v23 = vld [vmem:[#allocation7 + $0x588] sm:$0xff] }
  0xdd   : > { %v1670_v28 = vpack.c.bf16 %v575_v20, %v566_v19  ;;  %v665_v19 = vld [vmem:[#allocation7 + $0x848] sm:$0xff]  ;;  %v658_v20 = vld [vmem:[#allocation7 + $0x810] sm:$0xff] }
  0xde   : > { %v1120_v38 = vld [vmem:[#allocation10 + $0x18] sm:$0xff] }
  0xdf   : > { %1651 = vmatpush1.bf16.msra.mxu0 %v1650_v29  ;;  %1715 = vmatpush1.bf16.msra.mxu1 %v1714_v30  ;;  %v1734_v29 = vpack.c.bf16 %v577_v23, %v568_v21  ;;  %v1672_v30 = vpack.c.bf16 %v594_v25, %v585_v24  ;;  %v1752_v21 = vpack.c.bf16 %v668_v14, %v659_v13  ;;  %v675_v23 = vld [vmem:[#allocation7 + $0x898] sm:$0xff]  ;;  %v684_v24 = vld [vmem:[#allocation7 + $0x8e0] sm:$0xff]  ;;  %v677_v25 = vld [vmem:[#allocation7 + $0x8a8] sm:$0xff]  ;;  %v2175_v14 = vmov 0.0  }
  0xe0   : > { %1653 = vmatprep.subr.bf16.mxu0 %v1652_v31  ;;  %1717 = vmatprep.subr.bf16.mxu1 %v1716_v35  ;;  %v584_v31 = vld [vmem:[#allocation7 + $0x5c0] sm:$0xff]  ;;  %v595_v35 = vld [vmem:[#allocation7 + $0x618] sm:$0xff] }
  0xe1   : > { %v1674_v40 = vpack.c.bf16 %v593_v32, %v584_v31  ;;  %v683_v31 = vld [vmem:[#allocation7 + $0x8d8] sm:$0xff]  ;;  %v676_v32 = vld [vmem:[#allocation7 + $0x8a0] sm:$0xff] }
  0xe2   : > { %v1124_v52 = vld [vmem:[#allocation10 + $0x38] sm:$0xff] }
  0xe3   : > { %1655 = vmatpush1.bf16.msra.mxu0 %v1654_v41  ;;  %1719 = vmatpush1.bf16.msra.mxu1 %v1718_v44  ;;  %v1738_v41 = vpack.c.bf16 %v595_v35, %v586_v33  ;;  %v1676_v44 = vpack.c.bf16 %v612_v37, %v603_v36  ;;  %v1756_v33 = vpack.c.bf16 %v686_v26, %v677_v25  ;;  %v552_v35 = vld [vmem:[#allocation7 + $0x4c0] sm:$0xff]  ;;  %v561_v36 = vld [vmem:[#allocation7 + $0x508] sm:$0xff]  ;;  %v1118_v37 = vld [vmem:[#allocation10 + $0x8] sm:$0xff] }
  0xe4   : > { %1657 = vmatprep.subr.bf16.mxu0 %v1656_v45  ;;  %1721 = vmatprep.subr.bf16.mxu1 %v1720_v49  ;;  %v602_v45 = vld [vmem:[#allocation7 + $0x650] sm:$0xff]  ;;  %v613_v49 = vld [vmem:[#allocation7 + $0x6a8] sm:$0xff] }
  0xe5   : > { %v1678_v54 = vpack.c.bf16 %v611_v46, %v602_v45  ;;  %v417_v45 = vld [vmem:[#allocation7 + $0x88] sm:$0xff] }
  0xe6   : > { %v1117_v46 = vld [vmem:[#allocation10] sm:$0xff]  ;;  %v1128_v0 = vld [vmem:[#allocation10 + $0x58] sm:$0xff] }
  0xe7   : > { %1659 = vmatpush1.bf16.msra.mxu0 %v1658_v55  ;;  %1723 = vmatpush1.bf16.msra.mxu1 %v1722_v56  ;;  %v1742_v55 = vpack.c.bf16 %v613_v49, %v604_v47  ;;  %v1680_v56 = vpack.c.bf16 %v630_v51, %v621_v50  ;;  %v1792_v47 = vpack.c.bf16 %v1120_v38, %v1118_v37  ;;  %v570_v49 = vld [vmem:[#allocation7 + $0x550] sm:$0xff]  ;;  %v579_v50 = vld [vmem:[#allocation7 + $0x598] sm:$0xff]  ;;  %v1132_v13 = vld [vmem:[#allocation10 + $0x78] sm:$0xff] }
  0xe8   : > { %1661 = vmatprep.subr.bf16.mxu0 %v1660_v57  ;;  %1725 = vmatprep.subr.bf16.mxu1 %v1724_v61  ;;  %v620_v57 = vld [vmem:[#allocation7 + $0x6e0] sm:$0xff]  ;;  %v631_v61 = vld [vmem:[#allocation7 + $0x738] sm:$0xff] }
  0xe9   : > { %v1682_v2 = vpack.c.bf16 %v629_v58, %v620_v57  ;;  %v1122_v51 = vld [vmem:[#allocation10 + $0x28] sm:$0xff]  ;;  %v1121_v58 = vld [vmem:[#allocation10 + $0x20] sm:$0xff]  ;;  %v1136_v25 = vld [vmem:[#allocation10 + $0x98] sm:$0xff] }
  0xea   : > { %v435_v57 = vld [vmem:[#allocation7 + $0x118] sm:$0xff]  ;;  %v1140_v37 = vld [vmem:[#allocation10 + $0xb8] sm:$0xff] }
  0xeb   : > { %1663 = vmatpush1.bf16.msra.mxu0 %v1662_v3  ;;  %1727 = vmatpush1.bf16.msra.mxu1 %v1726_v4  ;;  %v1746_v3 = vpack.c.bf16 %v631_v61, %v622_v59  ;;  %v1684_v4 = vpack.c.bf16 %v648_v63, %v639_v62  ;;  %v1796_v59 = vpack.c.bf16 %v1124_v52, %v1122_v51  ;;  %v588_v61 = vld [vmem:[#allocation7 + $0x5e0] sm:$0xff]  ;;  %v597_v62 = vld [vmem:[#allocation7 + $0x628] sm:$0xff]  ;;  %v1126_v63 = vld [vmem:[#allocation10 + $0x48] sm:$0xff] }
  0xec   : > { %1665 = vmatprep.subr.bf16.mxu0 %v1664_v5  ;;  %1729 = vmatprep.subr.bf16.mxu1 %v1728_v10  ;;  %v638_v5 = vld [vmem:[#allocation7 + $0x770] sm:$0xff]  ;;  %v649_v10 = vld [vmem:[#allocation7 + $0x7c8] sm:$0xff] }
  0xed   : > { %v1686_v15 = vpack.c.bf16 %v647_v7, %v638_v5  ;;  %v453_v5 = vld [vmem:[#allocation7 + $0x1a8] sm:$0xff] }
  0xee   : > { %v1125_v7 = vld [vmem:[#allocation10 + $0x40] sm:$0xff]  ;;  %v1144_v51 = vld [vmem:[#allocation10 + $0xd8] sm:$0xff] }
  0xef   : > { %1667 = vmatpush1.bf16.msra.mxu0 %v1666_v16  ;;  %1731 = vmatpush1.bf16.msra.mxu1 %v1730_v17  ;;  %v1750_v16 = vpack.c.bf16 %v649_v10, %v640_v8  ;;  %v1688_v17 = vpack.c.bf16 %v666_v12, %v657_v11  ;;  %v1800_v8 = vpack.c.bf16 %v1128_v0, %v1126_v63  ;;  %v606_v10 = vld [vmem:[#allocation7 + $0x670] sm:$0xff]  ;;  %v615_v11 = vld [vmem:[#allocation7 + $0x6b8] sm:$0xff]  ;;  %v1148_v63 = vld [vmem:[#allocation10 + $0xf8] sm:$0xff] }
  0xf0   : > { %1669 = vmatprep.subr.bf16.mxu0 %v1668_v18  ;;  %1733 = vmatprep.subr.bf16.mxu1 %v1732_v22  ;;  %v656_v18 = vld [vmem:[#allocation7 + $0x800] sm:$0xff]  ;;  %v667_v22 = vld [vmem:[#allocation7 + $0x858] sm:$0xff] }
  0xf1   : > { %v1690_v27 = vpack.c.bf16 %v665_v19, %v656_v18  ;;  %v1130_v12 = vld [vmem:[#allocation10 + $0x68] sm:$0xff] }
  0xf2   : > { %v462_v18 = vld [vmem:[#allocation7 + $0x1f0] sm:$0xff]  ;;  %v471_v19 = vld [vmem:[#allocation7 + $0x238] sm:$0xff] }
  0xf3   : > { %1671 = vmatpush1.bf16.msra.mxu0 %v1670_v28  ;;  %1735 = vmatpush1.bf16.msra.mxu1 %v1734_v29  ;;  %v1754_v28 = vpack.c.bf16 %v667_v22, %v658_v20  ;;  %v1692_v29 = vpack.c.bf16 %v684_v24, %v675_v23  ;;  %v1129_v20 = vld [vmem:[#allocation10 + $0x60] sm:$0xff]  ;;  %v1131_v22 = vld [vmem:[#allocation10 + $0x70] sm:$0xff]  ;;  %v1774_v26 = vpack.c.bf16 %v471_v19, %v462_v18 }
  0xf4   : > { %1673 = vmatprep.subr.bf16.mxu0 %v1672_v30  ;;  %1737 = vmatprep.subr.bf16.mxu1 %v1736_v34  ;;  %v674_v30 = vld [vmem:[#allocation7 + $0x890] sm:$0xff]  ;;  %v685_v34 = vld [vmem:[#allocation7 + $0x8e8] sm:$0xff]  ;;  %v624_v23 = vld [vmem:[#allocation7 + $0x700] sm:$0xff] }
  0xf5   : > { %v1694_v39 = vpack.c.bf16 %v683_v31, %v674_v30  ;;  %v633_v24 = vld [vmem:[#allocation7 + $0x748] sm:$0xff] }
  0xf6   : > { %v489_v30 = vld [vmem:[#allocation7 + $0x2c8] sm:$0xff] }
  0xf7   : > { %1675 = vmatpush1.bf16.msra.mxu0 %v1674_v40  ;;  %1739 = vmatpush1.bf16.msra.mxu1 %v1738_v41  ;;  %v1758_v40 = vpack.c.bf16 %v685_v34, %v676_v32  ;;  %v1760_v41 = vpack.c.bf16 %v561_v36, %v552_v35  ;;  %v1133_v31 = vld [vmem:[#allocation10 + $0x80] sm:$0xff]  ;;  %v651_v35 = vld [vmem:[#allocation7 + $0x7d8] sm:$0xff] }
  0xf8   : > { %1677 = vmatprep.subr.bf16.mxu0 %v1676_v44  ;;  %1741 = vmatprep.subr.bf16.mxu1 %v1740_v48  ;;  %v408_v44 = vld [vmem:[#allocation7 + $0x40] sm:$0xff]  ;;  %v642_v34 = vld [vmem:[#allocation7 + $0x790] sm:$0xff] }
  0xf9   : > { %v1119_v48 = vld [vmem:[#allocation10 + $0x10] sm:$0xff]  ;;  %v1762_v53 = vpack.c.bf16 %v417_v45, %v408_v44  ;;  %v1138_v36 = vld [vmem:[#allocation10 + $0xa8] sm:$0xff]  ;;  %v1137_v45 = vld [vmem:[#allocation10 + $0xa0] sm:$0xff] }
  0xfa   : > { %v507_v44 = vld [vmem:[#allocation7 + $0x358] sm:$0xff] }
  0xfb   : > { %1679 = vmatpush1.bf16.msra.mxu0 %v1678_v54  ;;  %1743 = vmatpush1.bf16.msra.mxu1 %v1742_v55  ;;  %v1794_v54 = vpack.c.bf16 %v1119_v48, %v1117_v46  ;;  %v1764_v55 = vpack.c.bf16 %v579_v50, %v570_v49  ;;  %v1812_v46 = vpack.c.bf16 %v1140_v37, %v1138_v36  ;;  %v660_v48 = vld [vmem:[#allocation7 + $0x820] sm:$0xff]  ;;  %v669_v49 = vld [vmem:[#allocation7 + $0x868] sm:$0xff]  ;;  %v1142_v50 = vld [vmem:[#allocation10 + $0xc8] sm:$0xff] }
  0xfc   : > { %1681 = vmatprep.subr.bf16.mxu0 %v1680_v56  ;;  %1745 = vmatprep.subr.bf16.mxu1 %v1744_v60  ;;  %v426_v56 = vld [vmem:[#allocation7 + $0xd0] sm:$0xff]  ;;  %v1123_v60 = vld [vmem:[#allocation10 + $0x30] sm:$0xff] }
  0xfd   : > { %v1766_v1 = vpack.c.bf16 %v435_v57, %v426_v56  ;;  %v525_v56 = vld [vmem:[#allocation7 + $0x3e8] sm:$0xff] }
  0xfe   : > { %v1141_v57 = vld [vmem:[#allocation10 + $0xc0] sm:$0xff] }
  0xff   : > { %1683 = vmatpush1.bf16.msra.mxu0 %v1682_v2  ;;  %1747 = vmatpush1.bf16.msra.mxu1 %v1746_v3  ;;  %v1798_v2 = vpack.c.bf16 %v1123_v60, %v1121_v58  ;;  %v1768_v3 = vpack.c.bf16 %v597_v62, %v588_v61  ;;  %v1816_v58 = vpack.c.bf16 %v1144_v51, %v1142_v50  ;;  %v678_v60 = vld [vmem:[#allocation7 + $0x8b0] sm:$0xff]  ;;  %v687_v61 = vld [vmem:[#allocation7 + $0x8f8] sm:$0xff] }
 0x100   : > { %1685 = vmatprep.subr.bf16.mxu0 %v1684_v4  ;;  %1749 = vmatprep.subr.bf16.mxu1 %v1748_v9  ;;  %v444_v4 = vld [vmem:[#allocation7 + $0x160] sm:$0xff]  ;;  %v1146_v62 = vld [vmem:[#allocation10 + $0xe8] sm:$0xff] }
 0x101   : > { %v1127_v9 = vld [vmem:[#allocation10 + $0x50] sm:$0xff] }
 0x103   : > { %1687 = vmatpush1.bf16.msra.mxu0 %v1686_v15  ;;  %1751 = vmatpush1.bf16.msra.mxu1 %v1750_v16  ;;  %v1770_v15 = vpack.c.bf16 %v453_v5, %v444_v4  ;;  %v1802_v16 = vpack.c.bf16 %v1127_v9, %v1125_v7  ;;  %v543_v4 = vld [vmem:[#allocation7 + $0x478] sm:$0xff]  ;;  %v1820_v5 = vpack.c.bf16 %v1148_v63, %v1146_v62  ;;  %v1145_v7 = vld [vmem:[#allocation10 + $0xe0] sm:$0xff] }
 0x104   : > { %1689 = vmatprep.subr.bf16.mxu0 %v1688_v17  ;;  %1753 = vmatprep.subr.bf16.mxu1 %v1752_v21  ;;  %v1772_v17 = vpack.c.bf16 %v615_v11, %v606_v10  ;;  %v1804_v21 = vpack.c.bf16 %v1132_v13, %v1130_v12  ;;  %v2176_v11 = vmov 0   ;;  %v692_v12 = vlaneseq  ;;  %v292_v62 = vld [vmem:[%s291_s15] sm:$0x1] }
 0x105   : > { %1902 = vset.pattern.permute.xlu0 %v2176_v11 }
 0x106   : > { %v2444_v13 = vshrl.u32 %v692_v12, 7 }
 0x107   : > { %1691 = vmatpush1.bf16.msra.mxu0 %v1690_v27  ;;  %1755 = vmatpush1.bf16.msra.mxu1 %v1754_v28  ;;  %v1806_v27 = vpack.c.bf16 %v1131_v22, %v1129_v20  ;;  %v1776_v28 = vpack.c.bf16 %v633_v24, %v624_v23 }
 0x108   : > { %1693 = vmatprep.subr.bf16.mxu0 %v1692_v29  ;;  %1757 = vmatprep.subr.bf16.mxu1 %v1756_v33  ;;  %v480_v29 = vld [vmem:[#allocation7 + $0x280] sm:$0xff]  ;;  %v698_v12 = vsub.s32 1, %v2444_v13 }
 0x109   : > { %v1135_v33 = vld [vmem:[#allocation10 + $0x90] sm:$0xff]  ;;  %v1778_v38 = vpack.c.bf16 %v489_v30, %v480_v29  ;;  %v706_v29 = vsub.s32 3, %v2444_v13 }
 0x10b   : > { %1695 = vmatpush1.bf16.msra.mxu0 %v1694_v39  ;;  %1759 = vmatpush1.bf16.msra.mxu1 %v1758_v40  ;;  %v1810_v39 = vpack.c.bf16 %v1135_v33, %v1133_v31  ;;  %v1780_v40 = vpack.c.bf16 %v651_v35, %v642_v34  ;;  %v714_v33 = vsub.s32 5, %v2444_v13 }
 0x10c   : > { %1761 = vmatprep.subr.bf16.mxu0 %v1760_v41  ;;  %1793 = vmatprep.subr.bf16.mxu1 %v1792_v47  ;;  %v498_v41 = vld [vmem:[#allocation7 + $0x310] sm:$0xff]  ;;  %v1139_v47 = vld [vmem:[#allocation10 + $0xb0] sm:$0xff] }
 0x10d   : > { %v1782_v52 = vpack.c.bf16 %v507_v44, %v498_v41 }
 0x10e   : > { %944 = vmatmul.mubr.f32.vlgmr.msra.gmra.mrb[2].mxu0 %v2430_v43  ;;  %1015 = vmatmul.mubr.f32.vlgmr.msra.gmra.mrb[2].mxu1 %v2430_v43 }
 0x10f   : > { %1763 = vmatpush3.bf16.msra.mxu0 %v1762_v53  ;;  %1795 = vmatpush1.bf16.msra.mxu1 %v1794_v54  ;;  %v1814_v53 = vpack.c.bf16 %v1139_v47, %v1137_v45  ;;  %v1784_v54 = vpack.c.bf16 %v669_v49, %v660_v48  ;;  %v718_v47 = vsub.s32 6, %v2444_v13  ;;  %v722_v48 = vsub.s32 7, %v2444_v13 }
 0x110   : > { %1765 = vmatprep.subr.bf16.mxu0 %v1764_v55  ;;  %1797 = vmatprep.subr.bf16.mxu1 %v1796_v59  ;;  %v516_v55 = vld [vmem:[#allocation7 + $0x3a0] sm:$0xff] }
 0x111   : > { %1085 = vmatprep.mubr.f32.mxu0 %v2427_v42  ;;  %1221 = vmatprep.mubr.f32.mxu1 %v2175_v14  ;;  %v1134_v42 = vld [vmem:[#allocation10 + $0x88] sm:$0xff]  ;;  %v1143_v59 = vld [vmem:[#allocation10 + $0xd0] sm:$0xff]  ;;  %v1786_v0 = vpack.c.bf16 %v525_v56, %v516_v55 }
 0x112   : > { %v1808_v32 = vpack.c.bf16 %v1136_v25, %v1134_v42 }
 0x113   : > { %1767 = vmatpush3.bf16.msra.mxu0 %v1766_v1  ;;  %1799 = vmatpush1.bf16.msra.mxu1 %v1798_v2  ;;  %v1818_v1 = vpack.c.bf16 %v1143_v59, %v1141_v57  ;;  %v1788_v2 = vpack.c.bf16 %v687_v61, %v678_v60 }
 0x114   : > { %1769 = vmatprep.subr.bf16.mxu0 %v1768_v3  ;;  %1801 = vmatprep.subr.bf16.mxu1 %v1800_v8  ;;  %v534_v3 = vld [vmem:[#allocation7 + $0x430] sm:$0xff]  ;;  %v1147_v8 = vld [vmem:[#allocation10 + $0xf0] sm:$0xff] }
 0x115   : > { %v1790_v9 = vpack.c.bf16 %v543_v4, %v534_v3  ;;  %v1822_v10 = vpack.c.bf16 %v1147_v8, %v1145_v7  ;;  %v298_v3 = vld [vmem:[%s297_s16] sm:$0x1]  ;;  %v332_v4 = vrot.slane %v292_v62, 7 }
 0x116   : > { %v304_v8 = vld [vmem:[%s303_s27] sm:$0x1] }
 0x117   : > { %1771 = vmatpush3.bf16.msra.mxu0 %v1770_v15  ;;  %1803 = vmatpush1.bf16.msra.mxu1 %v1802_v16  ;;  %v694_v15 = vsub.s32 0, %v2444_v13  ;;  %v2447_v16 = vld [vmem:[#allocation9] sm:$0xff] }
 0x118   : > { %1773 = vmatprep.subr.bf16.mxu0 %v1772_v17  ;;  %1805 = vmatprep.subr.bf16.mxu1 %v1804_v21  ;;  %v707_v30 = vrot.slane %v2447_v16, %v706_v29  ;;  %v715_v36 = vrot.slane %v2447_v16, %v714_v33  ;;  %v719_v49 = vrot.slane %v2447_v16, %v718_v47 }
 0x119   : > { %v695_v17 = vrot.slane %v2447_v16, %v694_v15  ;;  %v723_v50 = vrot.slane %v2447_v16, %v722_v48 }
 0x11b   : > { %1775 = vmatpush3.bf16.msra.mxu0 %v1774_v26  ;;  %1807 = vmatpush1.bf16.msra.mxu1 %v1806_v27 }
 0x11c   : > { %1777 = vmatprep.subr.bf16.mxu0 %v1776_v28  ;;  %1809 = vmatprep.subr.bf16.mxu1 %v1808_v32 }
 0x11f   : > { %1779 = vmatpush3.bf16.msra.mxu0 %v1778_v38  ;;  %1811 = vmatpush1.bf16.msra.mxu1 %v1810_v39 }
 0x120   : > { %1781 = vmatprep.subr.bf16.mxu0 %v1780_v40  ;;  %1813 = vmatprep.subr.bf16.mxu1 %v1812_v46 }
 0x123   : > { %1783 = vmatpush3.bf16.msra.mxu0 %v1782_v52  ;;  %1815 = vmatpush1.bf16.msra.mxu1 %v1814_v53 }
 0x124   : > { %1785 = vmatprep.subr.bf16.mxu0 %v1784_v54  ;;  %1817 = vmatprep.subr.bf16.mxu1 %v1816_v58  ;;  %v1439_v58 = vld [vmem:[#allocation9 + $0x8] ss:$0 sm:$0xff] }
 0x127   : > { %1787 = vmatpush3.bf16.msra.mxu0 %v1786_v0  ;;  %1819 = vmatpush1.bf16.msra.mxu1 %v1818_v1 }
 0x128   : > { %1789 = vmatprep.subr.bf16.mxu0 %v1788_v2  ;;  %1821 = vmatprep.subr.bf16.mxu1 %v1820_v5  ;;  %v286_v5 = vld [vmem:[%s285_s18] sm:$0x1] }
 0x12b   : > { %1791 = vmatpush3.bf16.msra.mxu0 %v1790_v9  ;;  %1823 = vmatpush1.bf16.msra.mxu1 %v1822_v10  ;;  %v335_v9 = vrot.slane %v298_v3, 6  ;;  %v353_v10 = vsel %vm352_vm0, %v286_v5, %v332_v4 }
 0x12e   : > { %1086 = vmatmul.mubr.f32.vlgmr.msra.gmra.mrb[4].mxu0 %v2430_v43  ;;  %1222 = vmatmul.mubr.f32.vlgmr.msra.gmra.mrb[4].mxu1 %v2423_v6  ;;  %v702_v6 = vsub.s32 2, %v2444_v13 }
 0x130   : > { %v703_v23 = vrot.slane %v2447_v16, %v702_v6 }
 0x1a1   : > { %v803_v18 = vpop.f32.mrb[0].mxu0  ;;  %v874_v21 = vpop.f32.mrb[0].mxu1 }
 0x1a2   : > { %v804_v19 = vadd.f32 %v803_v18, %v695_v17  ;;  %v2450_v20 = vpop.f32.mrb[1].mxu0  ;;  %v876_v22 = vpop.f32.mrb[1].mxu1  ;;  %v875_v24 = vadd.f32 %v874_v21, %v703_v23  ;;  %v338_v17 = vrot.slane %v304_v8, 5  ;;  %v710_v18 = vsub.s32 4, %v2444_v13 }
 0x1a3   : > { %v877_v31 = vadd.f32 %v876_v22, %v707_v30  ;;  %v699_v22 = vrot.slane %v2447_v16, %v698_v12 }
 0x1a4   : > { %v1440_v43 = vmul.f32 -1.442695, %v804_v19  ;;  %v355_v19 = vsel %vm354_vm1, %v353_v10, %v335_v9  ;;  %v711_v23 = vrot.slane %v2447_v16, %v710_v18 }
 0x1a5   : > { %v1442_v32 = vmul.f32 -1.442695, %v877_v31  ;;  %v806_v29 = vadd.f32 %v2450_v20, %v699_v22  ;;  %v328_v31 = vld [vmem:[%s327_s23] sm:$0x1] }
 0x1a6   : > { %1903 = vpow2.f32 %v1440_v43  ;;  %v357_v43 = vsel %vm356_vm2, %v355_v19, %v338_v17 }
 0x1a7   : > { %1905 = vtanh.f32 %v875_v24  ;;  %v1441_v16 = vmul.f32 -1.442695, %v806_v29 }
 0x1b0   : > { %v1904_v42 = vpop.eup %1903 }
 0x1b1   : > { %v1094_v25 = vadd.f32 1.0, %v1904_v42  ;;  %v1906_v26 = vpop.eup %1905 }
 0x1b3   : > { %1907 = vrcp.f32 %v1094_v25  ;;  %v322_v25 = vld [vmem:[%s321_s22] sm:$0x1] }
 0x1b4   : > { %1909 = vpow2.f32 %v1442_v32  ;;  %v347_v32 = vrot.slane %v322_v25, 2 }
 0x1bd   : > { %v1908_v27 = vpop.eup %1907 }
 0x1be   : > { %v2454_v28 = vmul.f32 %v1908_v27, %v1906_v26  ;;  %v1910_v34 = vpop.eup %1909 }
 0x1bf   : > { %v1107_v35 = vadd.f32 1.0, %v1910_v34  ;;  %v350_v34 = vrot.slane %v328_v31, 1 }
 0x1c1   : > { %1911 = vrcp.f32 %v1107_v35 }
 0x1cb   : > { %v1912_v44 = vpop.eup %1911 }
 0x1e1   : > { %v2460_v37 = vpop.f32.mrb[2].mxu0  ;;  %v1016_v39 = vpop.f32.mrb[2].mxu1 }
 0x1e2   : > { %v947_v38 = vpop.f32.mrb[3].mxu0  ;;  %v1018_v41 = vpop.f32.mrb[3].mxu1  ;;  %v1017_v51 = vadd.f32 %v1016_v39, %v719_v49  ;;  %v946_v30 = vadd.f32 %v2460_v37, %v711_v23 }
 0x1e3   : > { %v948_v40 = vadd.f32 %v947_v38, %v715_v36  ;;  %v1019_v52 = vadd.f32 %v1018_v41, %v723_v50 }
 0x1e4   : > { %v1152_v53 = vrot.slane %v1017_v51, %v694_v15  ;;  %v1443_v35 = vmul.f32 -1.442695, %v946_v30 }
 0x1e5   : > { %1913 = vtanh.f32 %v948_v40  ;;  %v1156_v54 = vrot.slane %v1019_v52, %v694_v15  ;;  %v310_v15 = vld [vmem:[%s309_s20] sm:$0x1] }
 0x1e6   : > { %v341_v21 = vrot.slane %v310_v15, 4 }
 0x1e8   : > { %v359_v27 = vsel %vm358_vm3, %v357_v43, %v341_v21 }
 0x1ef   : > { %v1914_v45 = vpop.eup %1913 }
 0x1f0   : > { %v2462_v46 = vmul.f32 %v1914_v45, %v1912_v44 }
 0x201   : > { %v1501_v55 = vpop.f32.mrb[4].mxu0  ;;  %v1223_v56 = vpop.f32.mrb[4].mxu1 }
 0x202   : > { %v1502_v57 = vpop.f32.mrb[5].mxu0  ;;  %v1224_v59 = vadd.f32 %v1223_v56, %v1152_v53  ;;  %v1225_v61 = vpop.f32.mrb[5].mxu1 }
 0x203   : > { %v1503_v60 = vadd.f32 %v1502_v57, %v1501_v55  ;;  %v1226_v63 = vadd.f32 %v1225_v61, %v1156_v54 }
 0x204   : > { %v1444_v0 = vmul.f32 -1.442695, %v1224_v59 }
 0x205   : > { %v1088_v1 = vadd.f32 %v1503_v60, %v1439_v58  ;;  %v1445_v2 = vmul.f32 -1.442695, %v1226_v63 }
 0x206   : > { %1915 = vpow2.f32 %v1444_v0 }
 0x207   : > { %vm1262_vm7 = vcmp.ge.f32.partialorder %v1088_v1, 0.0  ;;  %1917 = vpow2.f32 %v1445_v2 }
 0x208   : > { %v1263_v7 = vsel %vm1262_vm7, 1.0, %v2175_v14  ;;  %v316_v14 = vld [vmem:[%s315_s21] sm:$0x1] }
 0x209   : > { %1266 = vperm.xlu0 %1902, %v1263_v7   ;;  %v1270_v11 = vsub.f32 1.0, %v1263_v7  ;;  %v344_v26 = vrot.slane %v316_v14, 3 }
 0x20b   : > { %v361_v33 = vsel %vm360_vm4, %v359_v27, %v344_v26 }
 0x20c   : > { %v363_v36 = vsel %vm362_vm5, %v361_v33, %v347_v32 }
 0x20d   : > { %1273 = vperm.xlu0 %1902, %v1270_v11   ;;  %v365_v38 = vsel %vm364_vm6, %v363_v36, %v350_v34 }
 0x210   : > { %v1916_v6 = vpop.eup %1915 }
 0x211   : > { %v1918_v24 = vpop.eup %1917  ;;  %v1234_v42 = vadd.f32 1.0, %v1916_v6 }
 0x212   : > { %v1235_v13 = vadd.f32 1.0, %v1918_v24 }
 0x213   : > { %1919 = vrcp.f32 %v1234_v42 }
 0x214   : > { %1921 = vrcp.f32 %v1235_v13 }
 0x215   : > { %1923 = vpow2.f32 %v1441_v16 }
 0x216   : > { %1925 = vpow2.f32 %v1443_v35 }
 0x21d   : > { %v1920_v39 = vpop.eup %1919 }
 0x21e   : > { %v1922_v20 = vpop.eup %1921  ;;  %v1240_v40 = vmul.f32 %v1920_v39, %v365_v38 }
 0x21f   : > { %v1247_v41 = vmul.f32 %v1922_v20, %v365_v38  ;;  %v1924_v49 = vpop.eup %1923 }
 0x220   : > { %v1241_v37 = vrot.slane %v1240_v40, 4  ;;  %v1926_v51 = vpop.eup %1925  ;;  %v1100_v54 = vadd.f32 1.0, %v1924_v49 }
 0x221   : > { %v1248_v44 = vrot.slane %v1247_v41, 4  ;;  %v1113_v56 = vadd.f32 1.0, %v1926_v51 }
 0x222   : > { %v1242_v45 = vadd.f32 %v1241_v37, %v1240_v40  ;;  %1927 = vrcp.f32 %v1100_v54 }
 0x223   : > { %v1249_v47 = vadd.f32 %v1248_v44, %v1247_v41  ;;  %1929 = vrcp.f32 %v1113_v56 }
 0x224   : > { %v1243_v48 = vrot.slane %v1242_v45, 2 }
 0x225   : > { %v1250_v50 = vrot.slane %v1249_v47, 2 }
 0x226   : > { %v1244_v52 = vadd.f32 %v1243_v48, %v1242_v45 }
 0x227   : > { %v1251_v53 = vadd.f32 %v1250_v50, %v1249_v47 }
 0x228   : > { %v1245_v55 = vrot.slane %v1244_v52, 1 }
 0x229   : > { %v1252_v57 = vrot.slane %v1251_v53, 1 }
 0x22a   : > { %v1246_v58 = vadd.f32 %v1245_v55, %v1244_v52 }
 0x22b   : > { %v1253_v59 = vadd.f32 %v1252_v57, %v1251_v53 }
 0x22c   : > { %v1255_v60 = vadd.f32 %v2454_v28, %v1246_v58  ;;  %v1928_v62 = vpop.eup %1927 }
 0x22d   : > { %v1257_v61 = vadd.f32 %v2462_v46, %v1253_v59  ;;  %v1930_v63 = vpop.eup %1929 }
 0x22e   : > { %1931 = vtanh.f32 %v1255_v60 }
 0x22f   : > { %1933 = vtanh.f32 %v1257_v61 }
 0x238   : > { %v1932_v0 = vpop.eup %1931 }
 0x239   : > { %v1934_v1 = vpop.eup %1933  ;;  %v1259_v2 = vmul.f32 %v1932_v0, %v1928_v62 }
 0x23a   : > { %v1261_v3 = vmul.f32 %v1934_v1, %v1930_v63 }
 0x288   : > { %v1267_v4 = vpop.permute.xlu0 %1266 }
 0x289   : > { %1468 = vst [vmem:[%s1466_s24 - $0x1] sm:$0x1] %v1267_v4  ;;  %v1269_v28 = vmul.f32 %v1267_v4, %v1257_v61  ;;  %v1280_v7 = vmul.f32 %v1267_v4, %v1261_v3 }
 0x28c   : > { %v1274_v5 = vpop.permute.xlu0 %1273 }
 0x28d   : > { %v1276_v46 = vmul.f32 %v1274_v5, %v1255_v60  ;;  %v1281_v8 = vmul.f32 %v1274_v5, %v1259_v2 }
 0x28f   : > { %v1277_v9 = vadd.f32 %v1276_v46, %v1269_v28  ;;  %v1282_v10 = vadd.f32 %v1281_v8, %v1280_v7 }
 0x291   : > { %1465 = vst [vmem:[%s1463_s19 - $0x1] sm:$0x1] %v1282_v10  ;;  %1462 = vst [vmem:[%s1460_s8 - $0x1] sm:$0x1] %v1277_v9 }
 0x292   : > { %2070 = shalt.err (!%p2067_p3)
}
 0x293   : > { %s2071_s17 = scalar_lea.hbm %s2581_s6, 128 }
 0x294   : > { %p2072_p11 = scmp.ne.s32.totalorder %s2581_s6, %s2071_s17  ;;  %p2077_p4 = scmp.lt.u32.totalorder %s2071_s17, %s2581_s6 }
 0x296   : > { %p2073_p6 = pnand %p2072_p11, %p1873_p10 }
 0x298   : > { %p2074_p7 = pneg %p2073_p6 }
 0x29a   : > { %p2079_p9 = pnand %p2077_p4, %p2074_p7 }
 0x29c   : > { %2082 = shalt.err (!%p2079_p9)
}
 0x29d   : > { %1843 = dma.vmem_to_hbm [thread:$0]  (%p1873_p10), %s1306_s0, 128, %s2581_s6, [#allocation14]  }
 0x29e   : > { %s2083_s21 = scalar_lea.vmem %s2494_s28, 128  ;;  %p2090_p13 = scmp.lt.s32.totalorder %s2494_s28, %s2494_s28 }
 0x29f   : > { %p2084_p8 = scmp.ne.s32.totalorder %s2494_s28, %s2083_s21  ;;  %p2091_p0 = scmp.lt.s32.totalorder %s2083_s21, %s2083_s21 }
 0x2a1   : > { %p2085_p12 = pnand %p2084_p8, %p1873_p10  ;;  %p2092_p1 = por %p2091_p0, %p2090_p13 }
 0x2a3   : > { %p2086_p5 = pneg %p2085_p12 }
 0x2a5   : > { %p2093_p2 = pnand %p2092_p1, %p2086_p5 }
 0x2a7   : > { %2096 = shalt.err (!%p2093_p2)
}
 0x2a8   : > { %s2097_s24 = scalar_lea.hbm %s2580_s5, 128 }
 0x2a9   : > { %p2098_p3 = scmp.ne.s32.totalorder %s2580_s5, %s2097_s24  ;;  %p2103_p7 = scmp.lt.u32.totalorder %s2097_s24, %s2580_s5 }
 0x2ab   : > { %p2099_p11 = pnand %p2098_p3, %p1873_p10 }
 0x2ad   : > { %p2100_p6 = pneg %p2099_p11 }
 0x2af   : > { %p2105_p4 = pnand %p2103_p7, %p2100_p6 }
 0x2b1   : > { %2108 = shalt.err (!%p2105_p4)
}
 0x2b2   : > { %1841 = dma.vmem_to_hbm [thread:$0]  (%p1873_p10), %s2494_s28, 128, %s2580_s5, [#allocation6]  }
 0x2b3   : > { %s2109_s9 = scalar_lea.vmem %s2498_s30, 128  ;;  %p2116_p5 = scmp.lt.s32.totalorder %s2498_s30, %s2498_s30 }
 0x2b4   : > { %p2110_p9 = scmp.ne.s32.totalorder %s2498_s30, %s2109_s9  ;;  %p2117_p13 = scmp.lt.s32.totalorder %s2109_s9, %s2109_s9 }
 0x2b6   : > { %p2111_p8 = pnand %p2110_p9, %p1873_p10  ;;  %p2118_p0 = por %p2117_p13, %p2116_p5 }
 0x2b8   : > { %p2112_p12 = pneg %p2111_p8 }
 0x2ba   : > { %p2119_p1 = pnand %p2118_p0, %p2112_p12 }
 0x2bc   : > { %2122 = shalt.err (!%p2119_p1)
}
 0x2bd   : > { %s2123_s17 = scalar_lea.hbm %s2582_s7, 128 }
 0x2be   : > { %p2124_p2 = scmp.ne.s32.totalorder %s2582_s7, %s2123_s17  ;;  %p2129_p6 = scmp.lt.u32.totalorder %s2123_s17, %s2582_s7 }
 0x2c0   : > { %p2125_p3 = pnand %p2124_p2, %p1873_p10 }
 0x2c2   : > { %p2126_p11 = pneg %p2125_p3 }
 0x2c4   : > { %p2131_p7 = pnand %p2129_p6, %p2126_p11 }
 0x2c6   : > { %2134 = shalt.err (!%p2131_p7)
}
 0x2c7   : > { %1845 = dma.vmem_to_hbm [thread:$0]  (%p1873_p10), %s2498_s30, 128, %s2582_s7, [#allocation14]  }
 0x2c8   : > { %2154 = dma.done.wait (%p1873_p10), [#allocation6], 128  }
 0x2c9   : > { %2156 = vsyncadd (%p1873_p10), [#allocation6], 4294967168 }
 0x2ca   : > { %2158 = dma.done.wait (%p1873_p10), [#allocation14], 256  }
 0x2cb   : > { %2160 = vsyncadd (%p1873_p10), [#allocation14], 4294967040 }
 0x2cc PF: > { %s27_s11 = sadd.s32 1, %s2163_s11  }
 0x2cd   : > { %p24_p4 = scmp.ge.s32.totalorder %s27_s11, 9  }
 0x2cf   :  { %26 = sbr.rel (!%p24_p4) target bundleno = 17 (0x11), region = 117 }
 0x2d6   :  { %1337 = vsyncpa [#allocation5], 1 }
 0x2d7   :  { %1339 = vsyncpa [#allocation5 + $0x1], 1 }
 0x2d8   :  { %1340 = vsyncpa [#allocation8], 1 }
 0x2d9   :  { %1341 = vsyncpa [#allocation11], 1 }
 0x2da   :  { %1342 = vsyncpa [#allocation6], 1 }
 0x2db   :  { %1344 = vsyncpa [#allocation6 + $0x1], 1 }
 0x2dc   :  { %1345 = vsyncpa [#allocation14], 1 }

</bundles_post_ra>
